<compile_context>
chip_gen: v7x
topology: tpu7x:2x2x1
jax: 0.10.0
libtpu: 0.0.40
codegen_flags: <defaults>
</compile_context>

<pallas_src>
import functools
import math

import jax
import jax.numpy as jnp
from jax.experimental import pallas as pl
from jax.experimental.pallas import tpu as pltpu


# ----------------------------- Pallas kernels -----------------------------

def _grid_pe_kernel(p_ref, out_ref, *, img_w, dh):
    """Dense-grid positional encoding, one (D, TILE_M) tile of (D, h*w_padded).

    p_ref : (Dh, 3) packed columns [a_x | a_y | off] with
            a_x = 4*pi*g0/w, a_y = 4*pi*g1/h,
            off = 2*pi*((1/w - 1)*g0 + (1/h - 1)*g1)
    out_ref[:Dh]  = sin(proj), out_ref[Dh:] = cos(proj)
    """
    tile_m = out_ref.shape[1]
    m0 = pl.program_id(0) * tile_m
    m = (m0 + jax.lax.broadcasted_iota(jnp.int32, (1, tile_m), 1)
         ).astype(jnp.float32)                                  # flat pixel id
    # Row index via float floor + exact +/-1 correction.  m, yi and img_w are
    # all integers exactly representable in f32 (valid for h*w < 2**24), so
    # the products/differences below are exact and the correction makes the
    # decomposition exact for arbitrary (non power-of-two) widths.
    yi = jnp.floor(m * (1.0 / img_w))                           # (1, TILE_M)
    rem = m - yi * img_w
    yi = yi + jnp.where(rem >= img_w, 1.0, 0.0) - jnp.where(rem < 0.0, 1.0, 0.0)
    xi = m - yi * img_w                                         # (1, TILE_M)

    a_x = p_ref[:, 0:1]                                         # (Dh, 1)
    a_y = p_ref[:, 1:2]
    off = p_ref[:, 2:3]
    proj = xi * a_x + yi * a_y + off                            # (Dh, TILE_M)

    # Stores are split along the sublane (D) axis only; each store is still
    # full lane width (TILE_M multiple of 128) => unmasked vst.
    out_ref[0:dh, :] = jnp.sin(proj)
    out_ref[dh:, :] = jnp.cos(proj)


def _point_pe_kernel(c_ref, p_ref, out_ref):
    """Positional encoding of explicit (un-normalized) point coordinates.

    c_ref : (TILE_M, 2) raw pixel coords (x, y)
    p_ref : (3, D) packed rows; the second half of row 2 carries an extra
            +pi/2 so that cos(x) == sin(x + pi/2) — one full-width sin store.
    """
    x = c_ref[:, 0:1]                                            # (TILE_M, 1)
    y = c_ref[:, 1:2]
    proj = x * p_ref[0:1, :] + y * p_ref[1:2, :] + p_ref[2:3, :]  # (TILE_M, D)
    out_ref[...] = jnp.sin(proj)


# ----------------------------- tiling helpers -----------------------------

def _pick_grid_tile(m):
    """Tile width for the flattened spatial axis.

    Biggest tile such that the grid still has >= 2 steps (so v7x's two
    TensorCores both get work); m is padded up to a tile multiple.
    """
    m_pad = -(-m // 128) * 128
    tile = 128
    for cand in (16384, 8192, 4096, 2048, 1024, 512, 256):
        if m_pad >= 2 * cand:
            tile = cand
            break
    m_pad = -(-m_pad // tile) * tile
    return tile, m_pad


def _pick_point_tile(m):
    """Tile length for the point (B*N) axis; >= 2 grid steps when possible."""
    m_pad = -(-m // 8) * 8
    tile = 8
    for cand in (1024, 512, 256, 128, 64, 32, 16):
        if m_pad >= 2 * cand:
            tile = cand
            break
    m_pad = -(-m_pad // tile) * tile
    return tile, m_pad


# ----------------------------- Pallas wrappers -----------------------------

def position_embedding_grid(gauss, size):
    """Equivalent of PositionEmbeddingRandom.forward(size) -> (D, h, w)."""
    h, w = size
    dh = gauss.shape[1]
    d = 2 * dh
    m = h * w
    two_pi = 2.0 * math.pi

    g0 = gauss[0].astype(jnp.float32)
    g1 = gauss[1].astype(jnp.float32)
    # Fold (2*(idx+0.5)/size - 1) @ gauss * 2*pi into one affine form.
    a_x = (2.0 * two_pi / w) * g0
    a_y = (2.0 * two_pi / h) * g1
    off = two_pi * ((1.0 / w - 1.0) * g0 + (1.0 / h - 1.0) * g1)
    packed = jnp.stack([a_x, a_y, off], axis=1)                 # (Dh, 3)

    tile_m, m_pad = _pick_grid_tile(m)
    pe_flat = pl.pallas_call(
        functools.partial(_grid_pe_kernel, img_w=float(w), dh=dh),
        out_shape=jax.ShapeDtypeStruct((d, m_pad), jnp.float32),
        grid=(m_pad // tile_m,),
        in_specs=[pl.BlockSpec((dh, 3), lambda i: (0, 0))],
        out_specs=pl.BlockSpec((d, tile_m), lambda i: (0, i)),
        compiler_params=pltpu.CompilerParams(
            dimension_semantics=("parallel",),
            vmem_limit_bytes=48 << 20),
        cost_estimate=pl.CostEstimate(
            flops=6 * d * m_pad,
            transcendentals=d * m_pad,
            bytes_accessed=4 * d * m_pad),
    )(packed)
    # (D, h*w_pad) -> slice pad -> (D, h, w): pure reshape, already in the
    # torch permute(2,0,1) layout; no transpose / HBM round-trip needed.
    if m_pad != m:
        pe_flat = pe_flat[:, :m]
    return pe_flat.reshape(d, h, w)


def position_embedding_with_coords(gauss, coords, image_size):
    """Equivalent of forward_with_coords(coords, image_size) -> (B, N, D)."""
    img_h, img_w = image_size
    b, n, _ = coords.shape
    dh = gauss.shape[1]
    d = 2 * dh
    two_pi = 2.0 * math.pi
    half_pi = 0.5 * math.pi

    g0 = gauss[0].astype(jnp.float32)
    g1 = gauss[1].astype(jnp.float32)
    # Fold coordinate normalization, the 2c-1 affine, the gauss matmul and the
    # 2*pi scale into a packed (3, D) parameter.  The second half of the
    # offset row carries +pi/2 so the cos half is sin(proj) too.
    b_x = (2.0 * two_pi / img_w) * g0
    b_y = (2.0 * two_pi / img_h) * g1
    off = -two_pi * (g0 + g1)
    packed = jnp.stack([
        jnp.concatenate([b_x, b_x]),
        jnp.concatenate([b_y, b_y]),
        jnp.concatenate([off, off + half_pi]),
    ], axis=0)                                                  # (3, D)

    m = b * n
    tile_m, m_pad = _pick_point_tile(m)
    c = coords.astype(jnp.float32).reshape(m, 2)
    if m_pad != m:
        c = jnp.pad(c, ((0, m_pad - m), (0, 0)))

    pe = pl.pallas_call(
        _point_pe_kernel,
        out_shape=jax.ShapeDtypeStruct((m_pad, d), jnp.float32),
        grid=(m_pad // tile_m,),
        in_specs=[pl.BlockSpec((tile_m, 2), lambda i: (i, 0)),
                  pl.BlockSpec((3, d), lambda i: (0, 0))],
        out_specs=pl.BlockSpec((tile_m, d), lambda i: (i, 0)),
        compiler_params=pltpu.CompilerParams(
            dimension_semantics=("parallel",)),
    )(c, packed)
    if m_pad != m:
        pe = pe[:m]
    return pe.reshape(b, n, d)


# ----------------------------- pure JAX reference -----------------------------

def _ref_pe_encoding(coords01, gauss):
    c = 2.0 * coords01 - 1.0
    c = c @ gauss
    c = 2.0 * math.pi * c
    return jnp.concatenate([jnp.sin(c), jnp.cos(c)], axis=-1)


def ref_forward(gauss, size):
    h, w = size
    ones = jnp.ones((h, w), jnp.float32)
    y_embed = (jnp.cumsum(ones, axis=0) - 0.5) / h
    x_embed = (jnp.cumsum(ones, axis=1) - 0.5) / w
    pe = _ref_pe_encoding(jnp.stack([x_embed, y_embed], axis=-1), gauss)
    return pe.transpose(2, 0, 1)


def ref_forward_with_coords(gauss, coords, image_size):
    img_h, img_w = image_size
    c = coords.astype(jnp.float32)
    c01 = jnp.stack([c[..., 0] / img_w, c[..., 1] / img_h], axis=-1)
    return _ref_pe_encoding(c01, gauss)


# ----------------------------- main -----------------------------

if __name__ == "__main__":
    num_pos_feats = 64          # module default -> D = 128 (lane-dense)
    key = jax.random.PRNGKey(0)
    kg, kc = jax.random.split(key)
    # scale=None/<=0 -> scale=1.0 in the module
    gauss = jax.random.normal(kg, (2, num_pos_feats), jnp.float32)

    # ---- forward(size): dense grid positional encoding ----
    for size in [(16, 16), (64, 64)]:
        pe = position_embedding_grid(gauss, size)
        jax.block_until_ready(pe)
        ref = ref_forward(gauss, size)
        assert pe.shape == (2 * num_pos_feats, *size), pe.shape
        assert bool(jnp.allclose(pe, ref, atol=2e-4, rtol=2e-4)), (
            size, float(jnp.max(jnp.abs(pe - ref))))

    # ---- forward_with_coords(coords, image_size) ----
    B, N = 2, 8
    image_size = (128, 128)     # (H, W)
    coords = jax.random.uniform(kc, (B, N, 2), jnp.float32, 0.0, 127.0)
    pe_pts = position_embedding_with_coords(gauss, coords, image_size)
    jax.block_until_ready(pe_pts)
    ref_pts = ref_forward_with_coords(gauss, coords, image_size)
    assert pe_pts.shape == (B, N, 2 * num_pos_feats), pe_pts.shape
    assert bool(jnp.allclose(pe_pts, ref_pts, atol=2e-4, rtol=2e-4)), (
        float(jnp.max(jnp.abs(pe_pts - ref_pts))))

    # TODO(synk): for grids with h*w >= 2**24 pixels the f32 flat-index trick
    # needs an int32 code path; not reachable at SAM sizes.
    print("KERNEL_OK")
</pallas_src>

<mosaic_0001>
module attributes {stable_mosaic.version = 11 : i64} {
  func.func @_grid_pe_kernel(%arg0: i32, %arg1: memref<64x3xf32, #tpu.memory_space<vmem>>, %arg2: memref<128x128xf32, #tpu.memory_space<vmem>>) attributes {dimension_semantics = [#tpu.dimension_semantics<parallel>], iteration_bounds = array<i64: 2>, scalar_prefetch = 0 : i64, scratch_operands = 0 : i64, tpu.core_type = #tpu.core_type<tc>, window_params = [{pipeline_mode = #tpu.pipeline_mode<synchronous>, transform_indices = @transform_0, window_bounds = array<i64: 64, 3>}, {transform_indices = @transform_1, window_bounds = array<i64: 128, 128>}]} {
    %c128_i32 = arith.constant 128 : i32
    %0 = arith.muli %arg0, %c128_i32 : i32
    %1 = tpu.iota {dimensions = array<i32: 1>} : vector<1x128xi32>
    %2 = vector.broadcast %0 : i32 to vector<1x128xi32>
    %3 = arith.addi %2, %1 : vector<1x128xi32>
    %4 = arith.sitofp %3 : vector<1x128xi32> to vector<1x128xf32>
    %cst = arith.constant 6.250000e-02 : f32
    %5 = vector.broadcast %cst : f32 to vector<1x128xf32>
    %6 = arith.mulf %4, %5 : vector<1x128xf32>
    %7 = math.floor %6 : vector<1x128xf32>
    %cst_0 = arith.constant 1.600000e+01 : f32
    %8 = vector.broadcast %cst_0 : f32 to vector<1x128xf32>
    %9 = arith.mulf %7, %8 : vector<1x128xf32>
    %10 = arith.subf %4, %9 : vector<1x128xf32>
    %cst_1 = arith.constant 1.600000e+01 : f32
    %11 = vector.broadcast %cst_1 : f32 to vector<1x128xf32>
    %12 = arith.cmpf oge, %10, %11 : vector<1x128xf32>
    %cst_2 = arith.constant 1.000000e+00 : f32
    %cst_3 = arith.constant 0.000000e+00 : f32
    %13 = vector.broadcast %cst_2 : f32 to vector<1x128xf32>
    %14 = vector.broadcast %cst_3 : f32 to vector<1x128xf32>
    %15 = arith.select %12, %13, %14 : vector<1x128xi1>, vector<1x128xf32>
    %16 = arith.addf %7, %15 : vector<1x128xf32>
    %cst_4 = arith.constant 0.000000e+00 : f32
    %17 = vector.broadcast %cst_4 : f32 to vector<1x128xf32>
    %18 = arith.cmpf olt, %10, %17 : vector<1x128xf32>
    %cst_5 = arith.constant 1.000000e+00 : f32
    %cst_6 = arith.constant 0.000000e+00 : f32
    %19 = vector.broadcast %cst_5 : f32 to vector<1x128xf32>
    %20 = vector.broadcast %cst_6 : f32 to vector<1x128xf32>
    %21 = arith.select %18, %19, %20 : vector<1x128xi1>, vector<1x128xf32>
    %22 = arith.subf %16, %21 : vector<1x128xf32>
    %cst_7 = arith.constant 1.600000e+01 : f32
    %23 = vector.broadcast %cst_7 : f32 to vector<1x128xf32>
    %24 = arith.mulf %22, %23 : vector<1x128xf32>
    %25 = arith.subf %4, %24 : vector<1x128xf32>
    %c0 = arith.constant 0 : index
    %c0_8 = arith.constant 0 : index
    %26 = vector.load %arg1[%c0, %c0_8] : memref<64x3xf32, #tpu.memory_space<vmem>>, vector<64x1xf32>
    %c0_9 = arith.constant 0 : index
    %c1 = arith.constant 1 : index
    %27 = vector.load %arg1[%c0_9, %c1] : memref<64x3xf32, #tpu.memory_space<vmem>>, vector<64x1xf32>
    %c0_10 = arith.constant 0 : index
    %c2 = arith.constant 2 : index
    %28 = vector.load %arg1[%c0_10, %c2] : memref<64x3xf32, #tpu.memory_space<vmem>>, vector<64x1xf32>
    %29 = vector.broadcast %25 : vector<1x128xf32> to vector<64x128xf32>
    %30 = vector.broadcast %26 : vector<64x1xf32> to vector<64x128xf32>
    %31 = arith.mulf %29, %30 : vector<64x128xf32>
    %32 = vector.broadcast %22 : vector<1x128xf32> to vector<64x128xf32>
    %33 = vector.broadcast %27 : vector<64x1xf32> to vector<64x128xf32>
    %34 = arith.mulf %32, %33 : vector<64x128xf32>
    %35 = arith.addf %31, %34 : vector<64x128xf32>
    %36 = vector.broadcast %28 : vector<64x1xf32> to vector<64x128xf32>
    %37 = arith.addf %35, %36 : vector<64x128xf32>
    %38 = math.sin %37 : vector<64x128xf32>
    %c0_11 = arith.constant 0 : index
    %c0_12 = arith.constant 0 : index
    %39 = vector.load %arg2[%c0_11, %c0_12] : memref<128x128xf32, #tpu.memory_space<vmem>>, vector<64x128xf32>
    tpu.vector_store %arg2[%c0_11, %c0_12], %38 {strides = array<i32>} : memref<128x128xf32, #tpu.memory_space<vmem>>, vector<64x128xf32>,
    %40 = math.cos %37 : vector<64x128xf32>
    %c64 = arith.constant 64 : index
    %c0_13 = arith.constant 0 : index
    %41 = vector.load %arg2[%c64, %c0_13] : memref<128x128xf32, #tpu.memory_space<vmem>>, vector<64x128xf32>
    tpu.vector_store %arg2[%c64, %c0_13], %40 {strides = array<i32>} : memref<128x128xf32, #tpu.memory_space<vmem>>, vector<64x128xf32>,
    return
  }
  func.func @transform_0(%arg0: i32) -> (i32, i32) {
    %c0_i32 = arith.constant 0 : i32
    %c0_i32_0 = arith.constant 0 : i32
    %c0_i32_1 = arith.constant 0 : i32
    return %c0_i32, %c0_i32_0 : i32, i32
  }
  func.func @transform_1(%arg0: i32) -> (i32, i32) {
    %c0_i32 = arith.constant 0 : i32
    %c0_i32_0 = arith.constant 0 : i32
    return %c0_i32, %arg0 : i32, i32
  }
}

</mosaic_0001>

<bundles_post_ra>
// kernel: tpu_custom_call.1
= control target key start
LH: loop header
LB: loop body
LE: loop exit
PB: predicated region body
PF: predicated region fallthrough
CT: control target
= control target key end

     0   :  { %6 = vsyncpa [#allocation3], 0  ;;  %s3206_s0 = inlined_call_operand.vmem [shape: f32[64,3], index: 0, kind: input, shape index: {}]   ;;  %s3207_s1 = inlined_call_operand.hbm [shape: f32[128,256], index: 1, kind: output, shape index: {}]  }
   0x1   :  { %8 = vsyncpa [#allocation3 + $0x1], 0  ;;  %s2275_s6 = smov 0   ;;  %s2277_s7 = smov 0  }
   0x2   :  { %s2279_s8 = smov 0   ;;  %s2281_s9 = smov 0  }
   0x3 LB: > { %s1991_s10 = sadd.s32 4294967295, %s2249_s9   ;;  %s1992_s11 = sadd.s32 4294967294, %s2249_s9   ;;  %s2249_s9 = sphi %s2281_s9, %s3225_s9   ;;  %s2245_s8 = sphi %s2279_s8, %s3224_s8   ;;  %s2241_s7 = sphi %s2277_s7, %s3223_s7   ;;  %s2237_s6 = sphi %s2275_s6, %s3222_s6  }
   0x4   : > { %s2298_s12 = sadd.s32 1, %s2249_s9   ;;  %s42_s13 = sadd.s32 1, %s2245_s8 }
   0x5   : > { %s39_s14 = ssub.s32 %s2249_s9, %s2298_s12  ;;  %p52_p0 = scmp.ne.s32.totalorder %s2245_s8, %s2241_s7 }
   0x6   : > { %p40_p1 = scmp.eq.s32.totalorder %s39_s14, 0  ;;  %p53_p2 = scmp.eq.s32.totalorder %s1991_s10, 1 }
   0x7   : > { %p58_p3 = scmp.ne.s32.totalorder %s2241_s7, %s2237_s6  ;;  %p59_p4 = scmp.eq.s32.totalorder %s1992_s11, 1 }
   0x8   : > { %s2310_s15 = scalar_select %p40_p1, %s2245_s8, %s42_s13  }
   0x9   : > { %p2312_p5 = por %p53_p2, %p52_p0  ;;  %p2316_p6 = por %p59_p4, %p58_p3 }
   0xa   : > { %p1994_p7 = scmp.ge.s32.totalorder %s2249_s9, 1  ;;  %p80_p8 = scmp.lt.s32.totalorder %s2249_s9, 3 }
   0xc   : > { %p81_p9 = pnand %p1994_p7, %p80_p8 }
   0xd   : > { %v115_v0 = vld [vmem:[%s3206_s0 + $0x10] sm:$0xff] (!%p81_p9)  ;;  %v113_v1 = vld [vmem:[%s3206_s0] sm:$0xff] (!%p81_p9)  ;;  %v2251_v2 = vmov (!%p81_p9), 0   ;;  %v116_v3 = vld [vmem:[%s3206_s0 + $0x18] sm:$0xff] (!%p81_p9)  ;;  %v2252_v9 = vmov (!%p81_p9), 1   ;;  %v2253_v10 = vmov (!%p81_p9), 2   ;;  %v96_v11 = vlaneseq (!%p81_p9) }
   0xe   : > { %84 = sbr.rel (%p81_p9) target bundleno = 443 (0x1bb), region = 24  ;;  %2150 = vset.pattern.permute.xlu1 (!%p81_p9), %v2251_v2  ;;  %2149 = vset.pattern.permute.xlu0 (!%p81_p9), %v2251_v2  ;;  %v114_v4 = vld [vmem:[%s3206_s0 + $0x8] sm:$0xff] (!%p81_p9)  ;;  %v117_v6 = vld [vmem:[%s3206_s0 + $0x20] sm:$0xff] (!%p81_p9)  ;;  %v120_v7 = vld [vmem:[%s3206_s0 + $0x38] sm:$0xff] (!%p81_p9)  ;;  %s2348_s5 = sshll.u32 (!%p81_p9), %s1991_s10, 7  ;;  %v2254_v20 = vmov (!%p81_p9), 0.0  }
   0xf   : > { %133 = vperm.xlu1 (!%p81_p9), %2150, %v115_v0   ;;  %123 = vperm.xlu0 (!%p81_p9), %2149, %v113_v1   ;;  %v118_v5 = vld [vmem:[%s3206_s0 + $0x28] sm:$0xff] (!%p81_p9)  ;;  %v119_v8 = vld [vmem:[%s3206_s0 + $0x30] sm:$0xff] (!%p81_p9)  ;;  %v97_v12 = vand.u32 (!%p81_p9), 127, %v96_v11  ;;  %v98_v13 = vstv (!%p81_p9), %s2348_s5  ;;  %s92_s10 = sand.u32 (!%p81_p9), 1, %s2241_s7   ;;  %s3156_s20 = scalar_lea.hbm (!%p81_p9), %s3207_s1, %s2348_s5 }
  0x10   : > { %s2623_s11 = sshll.u32 (!%p81_p9), %s92_s10, 7  ;;  %s3165_s21 = scalar_lea.sflag (!%p81_p9), [#allocation3], %s92_s10 }
  0x11   : > { %v99_v14 = vadd.s32 (!%p81_p9), %v98_v13, %v97_v12  ;;  %s2667_s13 = scalar_lea.vmem (!%p81_p9), [#allocation2], %s2623_s11  ;;  %s2261_s23 = smov (!%p81_p9), [#allocation2]  }
  0x12   : > { %s1942_s14 = sshll.u32 (!%p81_p9), %s2667_s13, 4  ;;  %s2191_s24 = sshll.u32 (!%p81_p9), %s2261_s23, 4  ;;  %s3158_s14 = int_to_ptr.vmem [resolvable:$true] %s1942_s14  ;;  %s2192_s24 = int_to_ptr.vmem [resolvable:$false] %s2191_s24 }
  0x13   : > { %138 = vperm.xlu1 (!%p81_p9), %2150, %v116_v3   ;;  %128 = vperm.xlu0 (!%p81_p9), %2149, %v114_v4   ;;  %v100_v15 = vcvt.s32.f32 (!%p81_p9), %v99_v14  ;;  %s2187_s22 = scalar_lea.vmem (!%p81_p9), %s3158_s14, 2048  ;;  %s2193_s25 = scalar_lea.vmem (!%p81_p9), %s2192_s24, 4096 }
  0x14   : > { %p2188_p10 = scmp.ne.s32.totalorder (!%p81_p9), %s3158_s14, %s2187_s22  ;;  %p2194_p13 = scmp.lt.s32.totalorder (!%p81_p9), %s3158_s14, %s2192_s24 }
  0x15   : > { %v101_v16 = vmul.f32 0.0625, %v100_v15  ;;  %p2195_p0 = scmp.lt.s32.totalorder %s2193_s25, %s2187_s22 }
  0x16   : > { %p2189_p11 = pnand %p2188_p10, %p2312_p5 }
  0x17   : > { %148 = vperm.xlu1 %2150, %v118_v5   ;;  %143 = vperm.xlu0 %2149, %v117_v6   ;;  %v102_v17 = vfloor.f32 %v101_v16  ;;  %p2196_p1 = por %p2195_p0, %p2194_p13 }
  0x18   : > { %p2190_p12 = pneg %p2189_p11 }
  0x19   : > { %v103_v18 = vmul.f32 16.0, %v102_v17 }
  0x1a   : > { %p2197_p2 = pnand %p2196_p1, %p2190_p12 }
  0x1b   : > { %158 = vperm.xlu1 %2150, %v120_v7   ;;  %153 = vperm.xlu0 %2149, %v119_v8   ;;  %v104_v19 = vsub.f32 %v100_v15, %v103_v18 }
  0x1d   : > { %vm105_vm0 = vcmp.ge.f32.partialorder %v104_v19, 16.0  ;;  %vm108_vm1 = vcmp.lt.f32.partialorder %v104_v19, 0.0 }
  0x1e   : > { %v106_v21 = vsel %vm105_vm0, 1.0, %v2254_v20  ;;  %v109_v23 = vsel %vm108_vm1, 1.0, %v2254_v20 }
  0x1f   : > { %2152 = vset.pattern.permute.xlu1 %v2252_v9  ;;  %2151 = vset.pattern.permute.xlu0 %v2252_v9  ;;  %v107_v22 = vadd.f32 %v106_v21, %v102_v17 }
  0x20   : > { %174 = vperm.xlu1 %2152, %v114_v4   ;;  %170 = vperm.xlu0 %2151, %v113_v1  }
  0x21   : > { %v2351_v24 = vsub.f32 %v107_v22, %v109_v23 }
  0x23   : > { %v111_v25 = vmul.f32 16.0, %v2351_v24 }
  0x24   : > { %178 = vperm.xlu1 %2152, %v115_v0   ;;  %182 = vperm.xlu0 %2151, %v116_v3  }
  0x25   : > { %v112_v28 = vsub.f32 %v100_v15, %v111_v25 }
  0x28   : > { %186 = vperm.xlu1 %2152, %v117_v6   ;;  %190 = vperm.xlu0 %2151, %v118_v5  }
  0x2c   : > { %194 = vperm.xlu1 %2152, %v119_v8   ;;  %198 = vperm.xlu0 %2151, %v120_v7  }
  0x30   : > { %2153 = vset.pattern.permute.xlu1 %v2253_v10  ;;  %2154 = vset.pattern.permute.xlu0 %v2253_v10 }
  0x31   : > { %218 = vperm.xlu1 %2153, %v113_v1   ;;  %222 = vperm.xlu0 %2154, %v114_v4  }
  0x35   : > { %226 = vperm.xlu1 %2153, %v115_v0   ;;  %234 = vperm.xlu0 %2154, %v117_v6  }
  0x39   : > { %230 = vperm.xlu1 %2153, %v116_v3   ;;  %242 = vperm.xlu0 %2154, %v119_v8  }
  0x3d   : > { %238 = vperm.xlu1 %2153, %v118_v5  }
  0x41   : > { %246 = vperm.xlu1 %2153, %v120_v7  }
  0x8e   : > { %v134_v26 = vpop.permute.xlu1 %133  ;;  %v124_v27 = vpop.permute.xlu0 %123 }
  0x8f   : > { %v161_v57 = vmul.f32 %v124_v27, %v112_v28  ;;  %v163_v1 = vmul.f32 %v134_v26, %v112_v28 }
  0x92   : > { %v139_v29 = vpop.permute.xlu1 %138  ;;  %v129_v30 = vpop.permute.xlu0 %128 }
  0x93   : > { %v164_v31 = vmul.f32 %v139_v29, %v112_v28  ;;  %v162_v58 = vmul.f32 %v129_v30, %v112_v28 }
  0x96   : > { %v149_v32 = vpop.permute.xlu1 %148  ;;  %v144_v33 = vpop.permute.xlu0 %143 }
  0x97   : > { %v166_v34 = vmul.f32 %v149_v32, %v112_v28  ;;  %v165_v35 = vmul.f32 %v144_v33, %v112_v28 }
  0x9a   : > { %v159_v36 = vpop.permute.xlu1 %158  ;;  %v154_v37 = vpop.permute.xlu0 %153 }
  0x9b   : > { %v2354_v38 = vmul.f32 %v159_v36, %v112_v28  ;;  %v167_v39 = vmul.f32 %v154_v37, %v112_v28  ;;  %v2255_v36 = vmov 683565275  }
  0x9f   : > { %v175_v40 = vpop.permute.xlu1 %174  ;;  %v171_v41 = vpop.permute.xlu0 %170 }
  0xa0   : > { %v202_v52 = vmul.f32 %v175_v40, %v2351_v24  ;;  %v201_v53 = vmul.f32 %v171_v41, %v2351_v24  ;;  %v2256_v41 = vmov 2475754826  }
  0xa2   : > { %v209_v61 = vadd.f32 %v201_v53, %v161_v57  ;;  %v210_v62 = vadd.f32 %v202_v52, %v162_v58  ;;  %v2260_v57 = vmov 1326507024  }
  0xa3   : > { %v179_v42 = vpop.permute.xlu1 %178  ;;  %v183_v43 = vpop.permute.xlu0 %182 }
  0xa4   : > { %v204_v44 = vmul.f32 %v183_v43, %v2351_v24  ;;  %v203_v60 = vmul.f32 %v179_v42, %v2351_v24  ;;  %v2257_v43 = vmov 2131351028  }
  0xa6   : > { %v2357_v45 = vadd.f32 %v204_v44, %v164_v31  ;;  %v211_v6 = vadd.f32 %v203_v60, %v163_v1 }
  0xa7   : > { %v187_v46 = vpop.permute.xlu1 %186  ;;  %v191_v47 = vpop.permute.xlu0 %190 }
  0xa8   : > { %v205_v48 = vmul.f32 %v187_v46, %v2351_v24  ;;  %v206_v49 = vmul.f32 %v191_v47, %v2351_v24  ;;  %v2258_v46 = vmov 2102212464  }
  0xaa   : > { %v213_v50 = vadd.f32 %v205_v48, %v165_v35  ;;  %v2361_v51 = vadd.f32 %v206_v49, %v166_v34  ;;  %v2259_v48 = vmov 920167782  }
  0xab   : > { %v195_v54 = vpop.permute.xlu1 %194  ;;  %v2365_v55 = vpop.permute.xlu0 %198 }
  0xac   : > { %v207_v56 = vmul.f32 %v195_v54, %v2351_v24 }
  0xae   : > { %v2368_v59 = vadd.f32 %v207_v56, %v167_v39 }
  0xb0   : > { %v219_v63 = vpop.permute.xlu1 %218  ;;  %v223_v0 = vpop.permute.xlu0 %222 }
  0xb1   : > { %v2371_v2 = vadd.f32 %v219_v63, %v209_v61  ;;  %v2373_v3 = vadd.f32 %v223_v0, %v210_v62 }
  0xb3   : > { %v257_v4 = vand.u32 2147483647, %v2371_v2  ;;  %v260_v5 = vand.u32 2139095040, %v2371_v2  ;;  %v361_v7 = vand.u32 2147483647, %v2373_v3  ;;  %v364_v8 = vand.u32 2139095040, %v2373_v3 }
  0xb4   : > { %v227_v9 = vpop.permute.xlu1 %226  ;;  %v235_v23 = vpop.permute.xlu0 %234  ;;  %vm259_vm0 = vcmp.lt.s32.totalorder %v2371_v2, 0 }
  0xb5   : > { %v261_v10 = vshrl.u32 %v260_v5, 23  ;;  %v2379_v11 = vadd.f32 %v227_v9, %v211_v6  ;;  %v264_v12 = vand.u32 8388607, %v257_v4  ;;  %v365_v13 = vshrl.u32 %v364_v8, 23 }
  0xb6   : > { %v368_v14 = vand.u32 8388607, %v361_v7  ;;  %v2386_v30 = vadd.f32 %v235_v23, %v213_v50  ;;  %vm2469_vm15 = vcmp.le.f32.partialorder %v257_v4, 0.7853982 }
  0xb7   : > { %v1997_v15 = vadd.s32 4294967169, %v261_v10  ;;  %v2001_v16 = vadd.s32 4294967169, %v365_v13  ;;  %v468_v17 = vand.u32 2139095040, %v2379_v11  ;;  %v265_v19 = vor.u32 8388608, %v264_v12 }
  0xb8   : > { %v369_v20 = vor.u32 8388608, %v368_v14  ;;  %v465_v34 = vand.u32 2147483647, %v2379_v11 }
  0xb9   : > { %v267_v18 = vadd.s32 1, %v1997_v15  ;;  %v371_v21 = vadd.s32 1, %v2001_v16  ;;  %v469_v22 = vshrl.u32 %v468_v17, 23  ;;  %v2388_v31 = vshll.u32 %v265_v19, 8 }
  0xba   : > { %v2392_v33 = vshll.u32 %v369_v20, 8 }
  0xbb   : > { %vm268_vm2 = vcmp.gt.s32.totalorder %v267_v18, 0  ;;  %vm372_vm3 = vcmp.gt.s32.totalorder %v371_v21, 0  ;;  %v2005_v26 = vadd.s32 4294967169, %v469_v22 }
  0xbc   : > { %v269_v25 = vsel %vm268_vm2, %v267_v18, 0  ;;  %v373_v29 = vsel %vm372_vm3, %v371_v21, 0  ;;  %vm363_vm2 = vcmp.lt.s32.totalorder %v2373_v3, 0 }
  0xbd   : > { %v270_v27 = vshrl.u32 %v269_v25, 5  ;;  %v271_v28 = vand.u32 31, %v269_v25  ;;  %v2390_v32 = vshrl.u32 %v373_v29, 5  ;;  %v375_v39 = vand.u32 31, %v373_v29 }
  0xbe   : > { %v2396_v40 = vadd.s32 1, %v2005_v26 }
  0xbf   : > { %v272_v35 = vsub.s32 32, %v271_v28  ;;  %v274_v37 = vshll.u32 %v2255_v36, %v271_v28  ;;  %v277_v42 = vshll.u32 %v2256_v41, %v271_v28  ;;  %v280_v44 = vshll.u32 %v2257_v43, %v271_v28 }
  0xc0   : > { %v283_v47 = vshll.u32 %v2258_v46, %v271_v28  ;;  %v286_v49 = vshll.u32 %v2259_v48, %v271_v28  ;;  %vm289_vm4 = vcmp.lt.s32.totalorder %v270_v27, 1  ;;  %vm290_vm5 = vcmp.lt.s32.totalorder %v270_v27, 2 }
  0xc1   : > { %v275_v50 = vshrl.u32 %v2256_v41, %v272_v35  ;;  %v278_v52 = vshrl.u32 %v2257_v43, %v272_v35  ;;  %v281_v53 = vshrl.u32 %v2258_v46, %v272_v35  ;;  %v273_v54 = vshrl.u32 %v2255_v36, %v272_v35 }
  0xc2   : > { %v284_v56 = vshrl.u32 %v2259_v48, %v272_v35  ;;  %v287_v58 = vshrl.u32 %v2260_v57, %v272_v35  ;;  %v376_v63 = vsub.s32 32, %v375_v39  ;;  %vm291_vm6 = vcmp.lt.s32.totalorder %v270_v27, 3 }
  0xc3   : > { %v276_v60 = vor.u32 %v275_v50, %v274_v37  ;;  %v279_v61 = vor.u32 %v278_v52, %v277_v42  ;;  %v282_v62 = vor.u32 %v281_v53, %v280_v44  ;;  %vm292_vm7 = vcmp.lt.s32.totalorder %v270_v27, 4 }
  0xc4   : > { %v285_v0 = vor.u32 %v284_v56, %v283_v47  ;;  %v288_v1 = vor.u32 %v287_v58, %v286_v49  ;;  %v378_v14 = vshll.u32 %v2255_v36, %v375_v39  ;;  %v379_v17 = vshrl.u32 %v2256_v41, %v376_v63 }
  0xc5   : > { %v293_v5 = vsel %vm289_vm4, %v273_v54, %v276_v60  ;;  %v294_v6 = vsel %vm292_vm7, %v282_v62, 2102212464  ;;  %v297_v8 = vsel %vm289_vm4, %v276_v60, %v279_v61  ;;  %v301_v9 = vsel %vm289_vm4, %v279_v61, %v282_v62 }
  0xc6   : > { %v295_v10 = vsel %vm291_vm6, %v279_v61, %v294_v6  ;;  %v298_v12 = vsel %vm292_vm7, %v285_v0, 920167782  ;;  %v302_v13 = vsel %vm292_vm7, %v288_v1, 1326507024  ;;  %v381_v18 = vshll.u32 %v2256_v41, %v375_v39 }
  0xc7   : > { %v299_v15 = vsel %vm291_vm6, %v282_v62, %v298_v12  ;;  %v303_v16 = vsel %vm291_vm6, %v285_v0, %v302_v13  ;;  %v296_v19 = vsel %vm290_vm5, %v293_v5, %v295_v10  ;;  %v382_v22 = vshrl.u32 %v2257_v43, %v376_v63 }
  0xc8   : > { %v300_v20 = vsel %vm290_vm5, %v297_v8, %v299_v15  ;;  %v304_v21 = vsel %vm290_vm5, %v301_v9, %v303_v16  ;;  %v380_v29 = vor.u32 %v379_v17, %v378_v14  ;;  %v384_v37 = vshll.u32 %v2257_v43, %v375_v39 }
  0xc9   : > { %v2419_v23 = vmul.u32.u64.low %v2388_v31, %v304_v21  ;;  %v2420_v25 = vmul.u32.u64.high %v2388_v31, %v304_v21, %v2419_v23  ;;  %v2423_v26 = vmul.u32.u64.low %v2388_v31, %v300_v20  ;;  %v2424_v28 = vmul.u32.u64.high %v2388_v31, %v300_v20, %v2423_v26 }
  0xca   : > { %v383_v35 = vor.u32 %v382_v22, %v381_v18  ;;  %v385_v42 = vshrl.u32 %v2258_v46, %v376_v63  ;;  %v377_v27 = vshrl.u32 %v2255_v36, %v376_v63  ;;  %v387_v44 = vshll.u32 %v2258_v46, %v375_v39 }
  0xcb   : > { %v388_v47 = vshrl.u32 %v2259_v48, %v376_v63  ;;  %v391_v49 = vshrl.u32 %v2260_v57, %v376_v63  ;;  %v312_v50 = vmul.u32 %v2388_v31, %v296_v19  ;;  %v390_v53 = vshll.u32 %v2259_v48, %v375_v39 }
  0xcc   : > { %v386_v52 = vor.u32 %v385_v42, %v384_v37  ;;  %vm393_vm8 = vcmp.lt.s32.totalorder %v2390_v32, 1  ;;  %vm314_vm9 = vc.u32 %v2420_v25, %v2423_v26  ;;  %v315_v54 = vadd.s32 1, %v2424_v28 }
  0xcd   : > { %v389_v56 = vor.u32 %v388_v47, %v387_v44  ;;  %vm394_vm10 = vcmp.lt.s32.totalorder %v2390_v32, 2  ;;  %v392_v58 = vor.u32 %v391_v49, %v390_v53  ;;  %vm395_vm11 = vcmp.lt.s32.totalorder %v2390_v32, 3 }
  0xce   : > { %vm396_vm12 = vcmp.lt.s32.totalorder %v2390_v32, 4  ;;  %v401_v60 = vsel %vm393_vm8, %v380_v29, %v383_v35  ;;  %v316_v31 = vsel %vm314_vm9, %v315_v54, %v2424_v28  ;;  %v405_v62 = vsel %vm393_vm8, %v383_v35, %v386_v52 }
  0xcf   : > { %v398_v61 = vsel %vm396_vm12, %v386_v52, 2102212464  ;;  %v402_v39 = vsel %vm396_vm12, %v389_v56, 920167782  ;;  %v317_v63 = vadd.s32 %v316_v31, %v312_v50  ;;  %v397_v0 = vsel %vm393_vm8, %v377_v27, %v380_v29 }
  0xd0   : > { %v403_v1 = vsel %vm395_vm11, %v386_v52, %v402_v39  ;;  %v406_v5 = vsel %vm396_vm12, %v392_v58, 1326507024  ;;  %v399_v6 = vsel %vm395_vm11, %v383_v35, %v398_v61  ;;  %vm476_vm13 = vcmp.gt.s32.totalorder %v2396_v40, 0 }
  0xd1   : > { %v404_v8 = vsel %vm394_vm10, %v401_v60, %v403_v1  ;;  %v407_v9 = vsel %vm395_vm11, %v389_v56, %v406_v5  ;;  %v318_v10 = vadd.s32 536870912, %v317_v63  ;;  %v400_v18 = vsel %vm394_vm10, %v397_v0, %v399_v6 }
  0xd2   : > { %v408_v12 = vsel %vm394_vm10, %v405_v62, %v407_v9  ;;  %v2449_v13 = vmul.u32.u64.low %v2392_v33, %v404_v8  ;;  %v2450_v14 = vmul.u32.u64.high %v2392_v33, %v404_v8, %v2449_v13  ;;  %v472_v19 = vand.u32 8388607, %v465_v34 }
  0xd3   : > { %v2453_v15 = vmul.u32.u64.low %v2392_v33, %v408_v12  ;;  %v2454_v16 = vmul.u32.u64.high %v2392_v33, %v408_v12, %v2453_v15  ;;  %v319_v17 = vshrl.u32 %v318_v10, 30  ;;  %v477_v20 = vsel %vm476_vm13, %v2396_v40, 0 }
  0xd4   : > { %v419_v22 = vadd.s32 1, %v2450_v14  ;;  %v676_v23 = vand.u32 2139095040, %v2386_v30  ;;  %v416_v28 = vmul.u32 %v2392_v33, %v400_v18  ;;  %v479_v37 = vand.u32 31, %v477_v20 }
  0xd5   : > { %v320_v21 = vshll.u32 %v319_v17, 30  ;;  %vm418_vm14 = vc.u32 %v2454_v16, %v2449_v13  ;;  %v473_v42 = vor.u32 8388608, %v472_v19  ;;  %v343_v47 = vsub.s32 4, %v319_v17 }
  0xd6   : > { %v420_v35 = vsel %vm418_vm14, %v419_v22, %v2450_v14  ;;  %v677_v44 = vshrl.u32 %v676_v23, 23  ;;  %v673_v40 = vand.u32 2147483647, %v2386_v30  ;;  %v480_v52 = vsub.s32 32, %v479_v37 }
  0xd7   : > { %v321_v29 = vsub.s32 %v317_v63, %v320_v21  ;;  %v421_v32 = vadd.s32 %v420_v35, %v416_v28  ;;  %v2476_v54 = vshll.u32 %v473_v42, 8  ;;  %v313_v56 = vadd.s32 %v2423_v26, %v2420_v25 }
  0xd8   : > { %v2480_v60 = vshrl.u32 %v477_v20, 5  ;;  %v2482_v31 = vadd.s32 4294967169, %v677_v44  ;;  %v344_v4 = vsel %vm259_vm0, %v343_v47, %v319_v17  ;;  %v2487_v61 = vadd.s32 %v2449_v13, %v2454_v16 }
  0xd9   : > { %v323_v27 = vsub.s32 0, %v321_v29  ;;  %v422_v49 = vadd.s32 536870912, %v421_v32  ;;  %v2492_v62 = vand.u32 8388607, %v673_v40  ;;  %v482_v25 = vshll.u32 %v2255_v36, %v479_v37 }
  0xda   : > { %v483_v26 = vshrl.u32 %v2256_v41, %v480_v52  ;;  %v485_v0 = vshll.u32 %v2256_v41, %v479_v37  ;;  %v486_v5 = vshrl.u32 %v2257_v43, %v480_v52  ;;  %v489_v6 = vshrl.u32 %v2258_v46, %v480_v52 }
  0xdb   : > { %v1998_v50 = vmin.u32 %v323_v27, %v321_v29  ;;  %v2474_v53 = vshrl.u32 %v422_v49, 30  ;;  %v492_v8 = vshrl.u32 %v2259_v48, %v480_v52  ;;  %v2504_v9 = vsel %vm2469_vm15, 0, %v344_v4 }
  0xdc   : > { %v481_v10 = vshrl.u32 %v2255_v36, %v480_v52  ;;  %v495_v12 = vshrl.u32 %v2260_v57, %v480_v52  ;;  %v488_v15 = vshll.u32 %v2257_v43, %v479_v37  ;;  %v491_v16 = vshll.u32 %v2258_v46, %v479_v37 }
  0xdd   : > { %v325_v58 = vclz %v1998_v50  ;;  %v424_v39 = vshll.u32 %v2474_v53, 30  ;;  %v484_v19 = vor.u32 %v483_v26, %v482_v25  ;;  %v494_v20 = vshll.u32 %v2259_v48, %v479_v37 }
  0xde   : > { %v487_v22 = vor.u32 %v486_v5, %v485_v0  ;;  %v490_v23 = vor.u32 %v489_v6, %v488_v15  ;;  %v493_v28 = vor.u32 %v492_v8, %v491_v16  ;;  %v447_v47 = vsub.s32 4, %v2474_v53 }
  0xdf   : > { %v1999_v63 = vadd.s32 4294967294, %v325_v58  ;;  %v2497_v1 = vsub.s32 %v421_v32, %v424_v39  ;;  %v496_v27 = vor.u32 %v495_v12, %v494_v20  ;;  %vm497_vm3 = vcmp.lt.s32.totalorder %v2480_v60, 1 }
  0xe0   : > { %vm498_vm4 = vcmp.lt.s32.totalorder %v2480_v60, 2  ;;  %vm499_vm5 = vcmp.lt.s32.totalorder %v2480_v60, 3  ;;  %vm500_vm6 = vcmp.lt.s32.totalorder %v2480_v60, 4  ;;  %vm2525_vm7 = vcmp.le.f32.partialorder %v361_v7, 0.7853982 }
  0xe1   : > { %vm2000_vm1 = vcmp.lt.s32.totalorder %v1999_v63, 0  ;;  %v427_v14 = vsub.s32 0, %v2497_v1  ;;  %v506_v52 = vsel %vm500_vm6, %v493_v28, 920167782  ;;  %v502_v39 = vsel %vm500_vm6, %v490_v23, 2102212464 }
  0xe2   : > { %v328_v13 = vsel %vm2000_vm1, 0, %v1999_v63  ;;  %v507_v63 = vsel %vm499_vm5, %v490_v23, %v506_v52  ;;  %v510_v25 = vsel %vm500_vm6, %v496_v27, 1326507024  ;;  %v501_v0 = vsel %vm497_vm3, %v481_v10, %v484_v19 }
  0xe3   : > { %v329_v17 = vsub.s32 32, %v328_v13  ;;  %v333_v18 = vsub.s32 4294967266, %v328_v13  ;;  %v2002_v21 = vmin.u32 %v427_v14, %v2497_v1  ;;  %v330_v35 = vshll.u32 %v321_v29, %v328_v13 }
  0xe4   : > { %v505_v29 = vsel %vm497_vm3, %v484_v19, %v487_v22  ;;  %v511_v5 = vsel %vm499_vm5, %v493_v28, %v510_v25  ;;  %v503_v15 = vsel %vm499_vm5, %v487_v22, %v502_v39  ;;  %v683_v16 = vadd.s32 1, %v2482_v31 }
  0xe5   : > { %v331_v32 = vshrl.u32 %v313_v56, %v329_v17  ;;  %v334_v42 = vadd.s32 127, %v333_v18  ;;  %v429_v44 = vclz %v2002_v21  ;;  %v509_v56 = vsel %vm497_vm3, %v487_v22, %v490_v23 }
  0xe6   : > { %v508_v7 = vsel %vm498_vm4, %v505_v29, %v507_v63  ;;  %v512_v12 = vsel %vm498_vm4, %v509_v56, %v511_v5  ;;  %v350_v22 = vadd.s32 3, %v2504_v9  ;;  %v448_v31 = vsel %vm363_vm2, %v447_v47, %v2474_v53 }
  0xe7   : > { %v332_v49 = vor.u32 %v331_v32, %v330_v35  ;;  %v335_v37 = vshll.u32 %v334_v42, 23  ;;  %v2003_v50 = vadd.s32 4294967294, %v429_v44  ;;  %v231_v35 = vpop.permute.xlu1 %230  ;;  %vm684_vm9 = vcmp.gt.s32.totalorder %v683_v16, 0 }
  0xe8   : > { %v2544_v18 = vmul.u32.u64.low %v2476_v54, %v512_v12  ;;  %v2545_v19 = vmul.u32.u64.high %v2476_v54, %v512_v12, %v2544_v18  ;;  %v2549_v23 = vmul.u32.u64.low %v2476_v54, %v508_v7  ;;  %v2550_v28 = vmul.u32.u64.high %v2476_v54, %v508_v7, %v2549_v23 }
  0xe9   : > { %v336_v58 = vor.u32 4788187, %v335_v37  ;;  %v339_v26 = vcvt.s32.f32 %v332_v49  ;;  %vm2004_vm8 = vcmp.lt.s32.totalorder %v2003_v50, 0  ;;  %v685_v27 = vsel %vm684_vm9, %v683_v16, 0 }
  0xea   : > { %v432_v8 = vsel %vm2004_vm8, 0, %v2003_v50  ;;  %v2562_v49 = vand.u32 3, %v2504_v9  ;;  %vm522_vm10 = vc.u32 %v2545_v19, %v2549_v23  ;;  %v2567_v37 = vadd.f32 %v231_v35, %v2357_v45 }
  0xeb   : > { %v337_v6 = vand.u32 2147483647, %v336_v58  ;;  %v433_v13 = vsub.s32 32, %v432_v8  ;;  %v437_v14 = vsub.s32 4294967266, %v432_v8  ;;  %v434_v10 = vshll.u32 %v2497_v1, %v432_v8 }
  0xec   : > { %v450_v60 = vsel %vm2525_vm7, 0, %v448_v31  ;;  %v523_v50 = vadd.s32 1, %v2550_v28  ;;  %v2575_v29 = vand.u32 3, %v350_v22  ;;  %v687_v52 = vand.u32 31, %v685_v27 }
  0xed   : > { %v340_v17 = vmul.f32 %v339_v26, %v337_v6  ;;  %v435_v20 = vshrl.u32 %v2487_v61, %v433_v13  ;;  %v438_v21 = vadd.s32 127, %v437_v14  ;;  %v504_v61 = vsel %vm498_vm4, %v501_v0, %v503_v15 }
  0xee   : > { %v520_v9 = vmul.u32 %v2476_v54, %v504_v61  ;;  %v524_v58 = vsel %vm522_vm10, %v523_v50, %v2550_v28  ;;  %v454_v39 = vadd.s32 3, %v450_v60  ;;  %v681_v63 = vor.u32 8388608, %v2492_v62 }
  0xef   : > { %v341_v32 = vxor.u32 2147483648, %v340_v17  ;;  %v436_v1 = vor.u32 %v435_v20, %v434_v10  ;;  %v439_v42 = vshll.u32 %v438_v21, 23  ;;  %v688_v25 = vsub.s32 32, %v687_v52 }
  0xf0   : > { %v525_v33 = vadd.s32 %v524_v58, %v520_v9  ;;  %v2580_v0 = vand.u32 3, %v450_v60  ;;  %v2582_v5 = vshrl.u32 %v685_v27, 5  ;;  %v690_v6 = vshll.u32 %v2255_v36, %v687_v52 }
  0xf1   : > { %v342_v44 = vsel %vm259_vm0, %v341_v32, %v340_v17  ;;  %v440_v47 = vor.u32 4788187, %v439_v42  ;;  %v443_v45 = vcvt.s32.f32 %v436_v1  ;;  %vm356_vm11 = vcmp.eq.s32.totalorder %v2575_v29, 2 }
  0xf2   : > { %v345_v53 = vsel %vm2469_vm15, %v2371_v2, %v342_v44  ;;  %vm1195_vm12 = vcmp.eq.s32.totalorder %v2562_v49, 2  ;;  %v526_v54 = vadd.s32 536870912, %v525_v33  ;;  %v691_v8 = vshrl.u32 %v2256_v41, %v688_v25 }
  0xf3   : > { %2155 = vcosq.f32 %v345_v53  ;;  %v441_v56 = vand.u32 2147483647, %v440_v47  ;;  %v694_v7 = vshrl.u32 %v2257_v43, %v688_v25  ;;  %v696_v12 = vshll.u32 %v2257_v43, %v687_v52 }
  0xf4   : > { %2157 = vsinq.f32 %v345_v53  ;;  %vm353_vm13 = vcmp.eq.s32.totalorder %v2575_v29, 0  ;;  %vm1192_vm14 = vcmp.eq.s32.totalorder %v2562_v49, 0  ;;  %v697_v13 = vshrl.u32 %v2258_v46, %v688_v25 }
  0xf5   : > { %v444_v26 = vmul.f32 %v443_v45, %v441_v56  ;;  %v699_v14 = vshll.u32 %v2258_v46, %v687_v52  ;;  %v700_v15 = vshrl.u32 %v2259_v48, %v688_v25  ;;  %vm352_vm15 = vcmp.lt.s32.totalorder %v2575_v29, 2 }
  0xf6   : > { %vm1191_vm0 = vcmp.lt.s32.totalorder %v2562_v49, 2  ;;  %v2597_v16 = vand.u32 3, %v454_v39  ;;  %v2599_v17 = vshrl.u32 %v526_v54, 30  ;;  %v693_v10 = vshll.u32 %v2256_v41, %v687_v52 }
  0xf7   : > { %v445_v62 = vxor.u32 2147483648, %v444_v26  ;;  %v2602_v18 = vshll.u32 %v681_v63, 8  ;;  %vm349_vm1 = vweird.f32 %v2371_v2  ;;  %v692_v21 = vor.u32 %v691_v8, %v690_v6 }
  0xf8   : > { %v698_v28 = vor.u32 %v697_v13, %v696_v12  ;;  %v701_v35 = vor.u32 %v700_v15, %v699_v14  ;;  %v528_v22 = vshll.u32 %v2599_v17, 30  ;;  %v695_v31 = vor.u32 %v694_v7, %v693_v10 }
  0xf9   : > { %v446_v20 = vsel %vm363_vm2, %v445_v62, %v444_v26  ;;  %vm708_vm3 = vcmp.lt.s32.totalorder %v2582_v5, 4  ;;  %v703_v1 = vshrl.u32 %v2260_v57, %v688_v25  ;;  %vm705_vm4 = vcmp.lt.s32.totalorder %v2582_v5, 1 }
  0xfa   : > { %v449_v32 = vsel %vm2525_vm7, %v2373_v3, %v446_v20  ;;  %v714_v42 = vsel %vm708_vm3, %v701_v35, 920167782  ;;  %v2617_v27 = vsub.s32 %v525_v33, %v528_v22  ;;  %vm706_vm2 = vcmp.lt.s32.totalorder %v2582_v5, 2 }
  0xfb   : > { %2159 = vcosq.f32 %v449_v32  ;;  %vm707_vm5 = vcmp.lt.s32.totalorder %v2582_v5, 3  ;;  %v689_v53 = vshrl.u32 %v2255_v36, %v688_v25  ;;  %v702_v47 = vshll.u32 %v2259_v48, %v687_v52 }
  0xfc   : > { %2161 = vsinq.f32 %v449_v32  ;;  %v710_v60 = vsel %vm708_vm3, %v698_v28, 2102212464  ;;  %vm467_vm6 = vcmp.lt.s32.totalorder %v2379_v11, 0  ;;  %v531_v9 = vsub.s32 0, %v2617_v27 }
  0xfd   : > { %v2156_v61 = vpop.eup %2155  ;;  %v713_v56 = vsel %vm705_vm4, %v692_v21, %v695_v31  ;;  %v715_v45 = vsel %vm707_vm5, %v698_v28, %v714_v42  ;;  %vm1298_vm7 = vcmp.eq.s32.totalorder %v2580_v0, 2  ;;  %v704_v39 = vor.u32 %v703_v1, %v702_v47 }
  0xfe   : > { %v2158_v4 = vpop.eup %2157  ;;  %v357_v44 = vxor.u32 2147483648, %v2156_v61  ;;  %v709_v33 = vsel %vm705_vm4, %v689_v53, %v692_v21  ;;  %vm1295_vm8 = vcmp.eq.s32.totalorder %v2580_v0, 0  ;;  %v2006_v26 = vmin.u32 %v531_v9, %v2617_v27 }
  0xff   : > { %v354_v50 = vxor.u32 2147483648, %v2158_v4  ;;  %v711_v6 = vsel %vm707_vm5, %v695_v31, %v710_v60  ;;  %vm456_vm9 = vcmp.lt.s32.totalorder %v2597_v16, 2  ;;  %vm1294_vm10 = vcmp.lt.s32.totalorder %v2580_v0, 2 }
 0x100   : > { %v358_v58 = vsel %vm356_vm11, %v357_v44, %v2158_v4  ;;  %v1197_v52 = vsel %vm1195_vm12, %v357_v44, %v2158_v4  ;;  %v716_v7 = vsel %vm706_vm2, %v713_v56, %v715_v45  ;;  %v572_v12 = vand.u32 2139095040, %v2567_v37 }
 0x101   : > { %v355_v63 = vsel %vm353_vm13, %v2156_v61, %v354_v50  ;;  %v1194_v25 = vsel %vm1192_vm14, %v2156_v61, %v354_v50  ;;  %vm453_vm11 = vweird.f32 %v2373_v3  ;;  %v533_v29 = vclz %v2006_v26 }
 0x102   : > { %v359_v54 = vsel %vm352_vm15, %v355_v63, %v358_v58  ;;  %v1198_v8 = vsel %vm1191_vm0, %v1194_v25, %v1197_v52  ;;  %v717_v49 = vsel %vm705_vm4, %v695_v31, %v698_v28  ;;  %vm457_vm12 = vcmp.eq.s32.totalorder %v2597_v16, 0 }
 0x103   : > { %v360_v62 = vsel %vm349_vm1, nan, %v359_v54  ;;  %v1199_v13 = vsel %vm349_vm1, nan, %v1198_v8  ;;  %v551_v14 = vsub.s32 4, %v2599_v17  ;;  %v712_v2 = vsel %vm706_vm2, %v709_v33, %v711_v6 }
 0x104   : > { %1089 = vst [vmem:[%s2667_s13] sm:$0xff] %v360_v62  ;;  %1921 = vst [vmem:[%s2667_s13 + $0x40] sm:$0xff] %v1199_v13  ;;  %v718_v15 = vsel %vm708_vm3, %v704_v39, 1326507024  ;;  %v2007_v10 = vadd.s32 4294967294, %v533_v29  ;;  %v2680_v21 = vmul.u32.u64.low %v2602_v18, %v716_v7  ;;  %v2681_v28 = vmul.u32.u64.high %v2602_v18, %v716_v7, %v2680_v21 }
 0x105   : > { %v719_v20 = vsel %vm707_vm5, %v701_v35, %v718_v15  ;;  %v2160_v32 = vpop.eup %2159  ;;  %vm460_vm13 = vcmp.eq.s32.totalorder %v2597_v16, 2  ;;  %v521_v22 = vadd.s32 %v2549_v23, %v2545_v19  ;;  %v573_v1 = vshrl.u32 %v572_v12, 23 }
 0x106   : > { %v720_v31 = vsel %vm706_vm2, %v717_v49, %v719_v20  ;;  %v2162_v42 = vpop.eup %2161  ;;  %v461_v61 = vxor.u32 2147483648, %v2160_v32  ;;  %vm2008_vm14 = vcmp.lt.s32.totalorder %v2007_v10, 0  ;;  %v552_v47 = vsel %vm467_vm6, %v551_v14, %v2599_v17  ;;  %v243_v49 = vpop.permute.xlu0 %242 }
 0x107   : > { %v2690_v35 = vmul.u32.u64.low %v2602_v18, %v720_v31  ;;  %v2691_v4 = vmul.u32.u64.high %v2602_v18, %v720_v31, %v2690_v35  ;;  %v458_v44 = vxor.u32 2147483648, %v2162_v42  ;;  %v536_v53 = vsel %vm2008_vm14, 0, %v2007_v10 }
 0x108   : > { %v728_v60 = vmul.u32 %v2602_v18, %v712_v2  ;;  %v462_v19 = vsel %vm460_vm13, %v461_v61, %v2162_v42  ;;  %v1300_v23 = vsel %vm1298_vm7, %v461_v61, %v2162_v42  ;;  %v537_v5 = vsub.s32 32, %v536_v53 }
 0x109   : > { %v2009_v50 = vadd.s32 4294967169, %v573_v1  ;;  %v459_v9 = vsel %vm457_vm12, %v2160_v32, %v458_v44  ;;  %v1297_v56 = vsel %vm1295_vm8, %v2160_v32, %v458_v44  ;;  %v541_v45 = vsub.s32 4294967266, %v536_v53 }
 0x10a   : > { %v731_v58 = vadd.s32 1, %v2681_v28  ;;  %v463_v17 = vsel %vm456_vm9, %v459_v9, %v462_v19  ;;  %v1301_v18 = vsel %vm1294_vm10, %v1297_v56, %v1300_v23  ;;  %v538_v52 = vshll.u32 %v2617_v27, %v536_v53 }
 0x10b   : > { %v539_v39 = vshrl.u32 %v521_v22, %v537_v5  ;;  %v464_v33 = vsel %vm453_vm11, nan, %v463_v17  ;;  %v1302_v63 = vsel %vm453_vm11, nan, %v1301_v18  ;;  %v542_v25 = vadd.s32 127, %v541_v45 }
 0x10c   : > { %vm730_vm15 = vc.u32 %v2691_v4, %v2680_v21  ;;  %1090 = vst [vmem:[%s2667_s13 + $0x8] sm:$0xff] %v464_v33  ;;  %1922 = vst [vmem:[%s2667_s13 + $0x48] sm:$0xff] %v1302_v63  ;;  %vm2719_vm0 = vcmp.le.f32.partialorder %v465_v34, 0.7853982  ;;  %v569_v27 = vand.u32 2147483647, %v2567_v37  ;;  %v2733_v22 = vadd.f32 %v243_v49, %v2368_v59 }
 0x10d   : > { %v732_v16 = vsel %vm730_vm15, %v731_v58, %v2681_v28  ;;  %v579_v26 = vadd.s32 1, %v2009_v50  ;;  %v540_v6 = vor.u32 %v539_v39, %v538_v52  ;;  %v543_v3 = vshll.u32 %v542_v25, 23 }
 0x10e   : > { %v554_v54 = vsel %vm2719_vm0, 0, %v552_v47  ;;  %v733_v8 = vadd.s32 %v732_v16, %v728_v60  ;;  %v576_v34 = vand.u32 8388607, %v569_v27  ;;  %vm675_vm3 = vcmp.lt.s32.totalorder %v2386_v30, 0 }
 0x10f   : > { %vm580_vm1 = vcmp.gt.s32.totalorder %v579_v26, 0  ;;  %v544_v7 = vor.u32 4788187, %v543_v3  ;;  %v558_v13 = vadd.s32 3, %v554_v54  ;;  %v547_v2 = vcvt.s32.f32 %v540_v6 }
 0x110   : > { %v734_v12 = vadd.s32 536870912, %v733_v8  ;;  %v581_v62 = vsel %vm580_vm1, %v579_v26, 0  ;;  %v2729_v28 = vand.u32 3, %v554_v54  ;;  %v577_v1 = vor.u32 8388608, %v576_v34 }
 0x111   : > { %v583_v29 = vand.u32 31, %v581_v62  ;;  %v545_v14 = vand.u32 2147483647, %v544_v7  ;;  %v2735_v31 = vand.u32 3, %v558_v13  ;;  %v582_v42 = vshrl.u32 %v581_v62, 5 }
 0x112   : > { %v735_v15 = vshrl.u32 %v734_v12, 30  ;;  %vm2750_vm4 = vcmp.le.f32.partialorder %v673_v40, 0.7853982  ;;  %v729_v63 = vadd.s32 %v2680_v21, %v2691_v4  ;;  %v2765_v6 = vshll.u32 %v577_v1, 8 }
 0x113   : > { %v584_v10 = vsub.s32 32, %v583_v29  ;;  %v548_v20 = vmul.f32 %v547_v2, %v545_v14  ;;  %v586_v60 = vshll.u32 %v2255_v36, %v583_v29  ;;  %v589_v19 = vshll.u32 %v2256_v41, %v583_v29 }
 0x114   : > { %v736_v32 = vshll.u32 %v735_v15, 30  ;;  %v592_v59 = vshll.u32 %v2257_v43, %v583_v29  ;;  %v759_v56 = vsub.s32 4, %v735_v15  ;;  %v595_v45 = vshll.u32 %v2258_v46, %v583_v29 }
 0x115   : > { %v587_v61 = vshrl.u32 %v2256_v41, %v584_v10  ;;  %v549_v35 = vxor.u32 2147483648, %v548_v20  ;;  %v590_v53 = vshrl.u32 %v2257_v43, %v584_v10  ;;  %v593_v47 = vshrl.u32 %v2258_v46, %v584_v10 }
 0x116   : > { %v2738_v44 = vsub.s32 %v733_v8, %v736_v32  ;;  %v596_v23 = vshrl.u32 %v2259_v48, %v584_v10  ;;  %v598_v18 = vshll.u32 %v2259_v48, %v583_v29  ;;  %v599_v52 = vshrl.u32 %v2260_v57, %v584_v10 }
 0x117   : > { %v550_v5 = vsel %vm467_vm6, %v549_v35, %v548_v20  ;;  %v588_v17 = vor.u32 %v587_v61, %v586_v60  ;;  %v591_v39 = vor.u32 %v590_v53, %v589_v19  ;;  %v594_v33 = vor.u32 %v593_v47, %v592_v59 }
 0x118   : > { %v739_v9 = vsub.s32 0, %v2738_v44  ;;  %v553_v58 = vsel %vm2719_vm0, %v2379_v11, %v550_v5  ;;  %v597_v25 = vor.u32 %v596_v23, %v595_v45  ;;  %v600_v16 = vor.u32 %v599_v52, %v598_v18 }
 0x119   : > { %2163 = vcosq.f32 %v553_v58  ;;  %v585_v0 = vshrl.u32 %v2255_v36, %v584_v10  ;;  %v884_v3 = vand.u32 2139095040, %v2733_v22  ;;  %v760_v54 = vsel %vm675_vm3, %v759_v56, %v735_v15 }
 0x11a   : > { %v2014_v40 = vmin.u32 %v739_v9, %v2738_v44  ;;  %2165 = vsinq.f32 %v553_v58  ;;  %vm601_vm2 = vcmp.lt.s32.totalorder %v582_v42, 1  ;;  %vm603_vm5 = vcmp.lt.s32.totalorder %v582_v42, 3 }
 0x11b   : > { %vm604_vm6 = vcmp.lt.s32.totalorder %v582_v42, 4  ;;  %vm564_vm7 = vcmp.eq.s32.totalorder %v2735_v31, 2  ;;  %v605_v7 = vsel %vm601_vm2, %v585_v0, %v588_v17  ;;  %v609_v4 = vsel %vm601_vm2, %v588_v17, %v591_v39 }
 0x11c   : > { %v741_v26 = vclz %v2014_v40  ;;  %v606_v21 = vsel %vm604_vm6, %v594_v33, 2102212464  ;;  %vm561_vm8 = vcmp.eq.s32.totalorder %v2735_v31, 0  ;;  %vm1398_vm9 = vcmp.eq.s32.totalorder %v2729_v28, 0 }
 0x11d   : > { %v607_v12 = vsel %vm603_vm5, %v591_v39, %v606_v21  ;;  %v610_v62 = vsel %vm604_vm6, %v597_v25, 920167782  ;;  %v613_v13 = vsel %vm601_vm2, %v591_v39, %v594_v33  ;;  %v614_v34 = vsel %vm604_vm6, %v600_v16, 1326507024 }
 0x11e   : > { %v2015_v8 = vadd.s32 4294967294, %v741_v26  ;;  %vm560_vm10 = vcmp.lt.s32.totalorder %v2735_v31, 2  ;;  %vm1397_vm11 = vcmp.lt.s32.totalorder %v2729_v28, 2  ;;  %vm602_vm13 = vcmp.lt.s32.totalorder %v582_v42, 2 }
 0x11f   : > { %v611_v29 = vsel %vm603_vm5, %v594_v33, %v610_v62  ;;  %v615_v49 = vsel %vm603_vm5, %v597_v25, %v614_v34  ;;  %vm557_vm14 = vweird.f32 %v2379_v11  ;;  %v762_v2 = vsel %vm2750_vm4, 0, %v760_v54 }
 0x120   : > { %vm2016_vm12 = vcmp.lt.s32.totalorder %v2015_v8, 0  ;;  %v612_v15 = vsel %vm602_vm13, %v609_v4, %v611_v29  ;;  %v616_v10 = vsel %vm602_vm13, %v613_v13, %v615_v49  ;;  %v608_v1 = vsel %vm602_vm13, %v605_v7, %v607_v12  ;;  %v239_v4 = vpop.permute.xlu1 %238 }
 0x121   : > { %v744_v14 = vsel %vm2016_vm12, 0, %v2015_v8  ;;  %v885_v61 = vshrl.u32 %v884_v3, 23  ;;  %v2782_v35 = vmul.u32.u64.low %v2765_v6, %v616_v10  ;;  %v2783_v53 = vmul.u32.u64.high %v2765_v6, %v616_v10, %v2782_v35 }
 0x122   : > { %v745_v20 = vsub.s32 32, %v744_v14  ;;  %v749_v32 = vsub.s32 4294967266, %v744_v14  ;;  %v2786_v47 = vmul.u32.u64.low %v2765_v6, %v612_v15  ;;  %v2787_v42 = vmul.u32.u64.high %v2765_v6, %v612_v15, %v2786_v47 }
 0x123   : > { %v2164_v60 = vpop.eup %2163  ;;  %v746_v19 = vshll.u32 %v2738_v44, %v744_v14  ;;  %v2021_v5 = vadd.s32 4294967169, %v885_v61  ;;  %vm1401_vm15 = vcmp.eq.s32.totalorder %v2729_v28, 2  ;;  %v766_v45 = vadd.s32 3, %v762_v2 }
 0x124   : > { %v747_v59 = vshrl.u32 %v729_v63, %v745_v20  ;;  %v750_v23 = vadd.s32 127, %v749_v32  ;;  %v2166_v9 = vpop.eup %2165  ;;  %v565_v56 = vxor.u32 2147483648, %v2164_v60  ;;  %v881_v58 = vand.u32 2147483647, %v2733_v22 }
 0x125   : > { %v562_v17 = vxor.u32 2147483648, %v2166_v9  ;;  %v891_v40 = vadd.s32 1, %v2021_v5  ;;  %v624_v44 = vmul.u32 %v2765_v6, %v608_v1  ;;  %vm626_vm0 = vc.u32 %v2783_v53, %v2786_v47 }
 0x126   : > { %v748_v18 = vor.u32 %v747_v59, %v746_v19  ;;  %v751_v52 = vshll.u32 %v750_v23, 23  ;;  %v566_v39 = vsel %vm564_vm7, %v565_v56, %v2166_v9  ;;  %v1403_v33 = vsel %vm1401_vm15, %v565_v56, %v2166_v9 }
 0x127   : > { %v563_v63 = vsel %vm561_vm8, %v2164_v60, %v562_v17  ;;  %v1400_v25 = vsel %vm1398_vm9, %v2164_v60, %v562_v17  ;;  %v627_v6 = vadd.s32 1, %v2787_v42  ;;  %vm892_vm1 = vcmp.gt.s32.totalorder %v891_v40, 0 }
 0x128   : > { %v752_v16 = vor.u32 4788187, %v751_v52  ;;  %v755_v26 = vcvt.s32.f32 %v748_v18  ;;  %v567_v0 = vsel %vm560_vm10, %v563_v63, %v566_v39  ;;  %v1404_v3 = vsel %vm1397_vm11, %v1400_v25, %v1403_v33 }
 0x129   : > { %v568_v54 = vsel %vm557_vm14, nan, %v567_v0  ;;  %v1405_v8 = vsel %vm557_vm14, nan, %v1404_v3  ;;  %v893_v21 = vsel %vm892_vm1, %v891_v40, 0  ;;  %v628_v28 = vsel %vm626_vm0, %v627_v6, %v2787_v42 }
 0x12a   : > { %v753_v7 = vand.u32 2147483647, %v752_v16  ;;  %1091 = vst [vmem:[%s2667_s13 + $0x10] sm:$0xff] %v568_v54  ;;  %1923 = vst [vmem:[%s2667_s13 + $0x50] sm:$0xff] %v1405_v8  ;;  %v895_v31 = vand.u32 31, %v893_v21  ;;  %v629_v62 = vadd.s32 %v628_v28, %v624_v44  ;;  %v2820_v11 = vadd.f32 %v239_v4, %v2361_v51 }
 0x12b   : > { %v888_v13 = vand.u32 8388607, %v881_v58  ;;  %v2822_v49 = vand.u32 3, %v766_v45  ;;  %v2824_v14 = vand.u32 3, %v762_v2  ;;  %v2826_v10 = vshrl.u32 %v893_v21, 5 }
 0x12c   : > { %v756_v12 = vmul.f32 %v755_v26, %v753_v7  ;;  %v896_v34 = vsub.s32 32, %v895_v31  ;;  %v630_v15 = vadd.s32 536870912, %v629_v62  ;;  %v898_v60 = vshll.u32 %v2255_v36, %v895_v31 }
 0x12d   : > { %v907_v19 = vshll.u32 %v2258_v46, %v895_v31  ;;  %v910_v59 = vshll.u32 %v2259_v48, %v895_v31  ;;  %v901_v5 = vshll.u32 %v2256_v41, %v895_v31  ;;  %v904_v9 = vshll.u32 %v2257_v43, %v895_v31 }
 0x12e   : > { %v757_v29 = vxor.u32 2147483648, %v756_v12  ;;  %v899_v20 = vshrl.u32 %v2256_v41, %v896_v34  ;;  %v902_v32 = vshrl.u32 %v2257_v43, %v896_v34  ;;  %v905_v1 = vshrl.u32 %v2258_v46, %v896_v34 }
 0x12f   : > { %v2833_v35 = vshrl.u32 %v630_v15, 30  ;;  %v908_v51 = vshrl.u32 %v2259_v48, %v896_v34  ;;  %v911_v42 = vshrl.u32 %v2260_v57, %v896_v34  ;;  %v780_v17 = vand.u32 2139095040, %v2820_v11 }
 0x130   : > { %v758_v61 = vsel %vm675_vm3, %v757_v29, %v756_v12  ;;  %v900_v18 = vor.u32 %v899_v20, %v898_v60  ;;  %v903_v52 = vor.u32 %v902_v32, %v901_v5  ;;  %v906_v40 = vor.u32 %v905_v1, %v904_v9 }
 0x131   : > { %v761_v2 = vsel %vm2750_vm4, %v2386_v30, %v758_v61  ;;  %v632_v23 = vshll.u32 %v2833_v35, 30  ;;  %v909_v56 = vor.u32 %v908_v51, %v907_v19  ;;  %v912_v45 = vor.u32 %v911_v42, %v910_v59 }
 0x132   : > { %2167 = vcosq.f32 %v761_v2  ;;  %v208_v39 = vmul.f32 %v2365_v55, %v2351_v24  ;;  %vm1607_vm3 = vcmp.eq.s32.totalorder %v2824_v14, 2  ;;  %v889_v44 = vor.u32 8388608, %v888_v13 }
 0x133   : > { %2169 = vsinq.f32 %v761_v2  ;;  %v2847_v50 = vsub.s32 %v629_v62, %v632_v23  ;;  %vm916_vm4 = vcmp.lt.s32.totalorder %v2826_v10, 4  ;;  %vm1604_vm2 = vcmp.eq.s32.totalorder %v2824_v14, 0 }
 0x134   : > { %vm913_vm5 = vcmp.lt.s32.totalorder %v2826_v10, 1  ;;  %v922_v63 = vsel %vm916_vm4, %v909_v56, 920167782  ;;  %v926_v25 = vsel %vm916_vm4, %v912_v45, 1326507024  ;;  %v781_v16 = vshrl.u32 %v780_v17, 23 }
 0x135   : > { %v635_v33 = vsub.s32 0, %v2847_v50  ;;  %vm768_vm6 = vcmp.lt.s32.totalorder %v2822_v49, 2  ;;  %vm1603_vm7 = vcmp.lt.s32.totalorder %v2824_v14, 2  ;;  %vm915_vm8 = vcmp.lt.s32.totalorder %v2826_v10, 3 }
 0x136   : > { %v921_v55 = vsel %vm913_vm5, %v900_v18, %v903_v52  ;;  %v925_v26 = vsel %vm913_vm5, %v903_v52, %v906_v40  ;;  %vm765_vm9 = vweird.f32 %v2386_v30  ;;  %vm769_vm10 = vcmp.eq.s32.totalorder %v2822_v49, 0 }
 0x137   : > { %v2010_v24 = vmin.u32 %v635_v33, %v2847_v50  ;;  %vm772_vm11 = vcmp.eq.s32.totalorder %v2822_v49, 2  ;;  %v923_v0 = vsel %vm915_vm8, %v906_v40, %v922_v63  ;;  %v927_v3 = vsel %vm915_vm8, %v909_v56, %v926_v25 }
 0x138   : > { %v897_v54 = vshrl.u32 %v2255_v36, %v896_v34  ;;  %vm914_vm12 = vcmp.lt.s32.totalorder %v2826_v10, 2  ;;  %v929_v8 = vshll.u32 %v889_v44, 8  ;;  %v918_v7 = vsel %vm916_vm4, %v906_v40, 2102212464 }
 0x139   : > { %v637_v6 = vclz %v2010_v24  ;;  %v924_v21 = vsel %vm914_vm12, %v921_v55, %v923_v0  ;;  %v928_v4 = vsel %vm914_vm12, %v925_v26, %v927_v3  ;;  %v2017_v28 = vadd.s32 4294967169, %v781_v16 }
 0x13a   : > { %v625_v12 = vadd.s32 %v2786_v47, %v2783_v53  ;;  %v2885_v13 = vmul.u32.u64.low %v929_v8, %v928_v4  ;;  %v2886_v34 = vmul.u32.u64.high %v929_v8, %v928_v4, %v2885_v13  ;;  %v917_v20 = vsel %vm913_vm5, %v897_v54, %v900_v18 }
 0x13b   : > { %v2011_v62 = vadd.s32 4294967294, %v637_v6  ;;  %v2890_v32 = vmul.u32.u64.low %v929_v8, %v924_v21  ;;  %v2891_v1 = vmul.u32.u64.high %v929_v8, %v924_v21, %v2890_v32  ;;  %v919_v51 = vsel %vm915_vm8, %v903_v52, %v918_v7 }
 0x13c   : > { %v2168_v31 = vpop.eup %2167  ;;  %v2897_v53 = vadd.f32 %v208_v39, %v2354_v38  ;;  %v787_v60 = vadd.s32 1, %v2017_v28  ;;  %v655_v38 = vsub.s32 4, %v2833_v35  ;;  %v920_v45 = vsel %vm914_vm12, %v917_v20, %v919_v51 }
 0x13d   : > { %v2170_v29 = vpop.eup %2169  ;;  %v773_v15 = vxor.u32 2147483648, %v2168_v31  ;;  %vm2012_vm13 = vcmp.lt.s32.totalorder %v2011_v62, 0  ;;  %vm938_vm14 = vc.u32 %v2886_v34, %v2890_v32  ;;  %v939_v40 = vadd.s32 1, %v2891_v1 }
 0x13e   : > { %v770_v61 = vxor.u32 2147483648, %v2170_v29  ;;  %v640_v2 = vsel %vm2012_vm13, 0, %v2011_v62  ;;  %vm788_vm15 = vcmp.gt.s32.totalorder %v787_v60, 0  ;;  %vm571_vm0 = vcmp.lt.s32.totalorder %v2567_v37, 0 }
 0x13f   : > { %v774_v47 = vsel %vm772_vm11, %v773_v15, %v2170_v29  ;;  %v1609_v42 = vsel %vm1607_vm3, %v773_v15, %v2170_v29  ;;  %v641_v23 = vsub.s32 32, %v640_v2  ;;  %v645_v56 = vsub.s32 4294967266, %v640_v2 }
 0x140   : > { %v771_v19 = vsel %vm769_vm10, %v2168_v31, %v770_v61  ;;  %v1606_v59 = vsel %vm1604_vm2, %v2168_v31, %v770_v61  ;;  %v642_v49 = vshll.u32 %v2847_v50, %v640_v2  ;;  %v936_v10 = vmul.u32 %v929_v8, %v920_v45 }
 0x141   : > { %v775_v5 = vsel %vm768_vm6, %v771_v19, %v774_v47  ;;  %v1610_v9 = vsel %vm1603_vm7, %v1606_v59, %v1609_v42  ;;  %v643_v52 = vshrl.u32 %v625_v12, %v641_v23  ;;  %v646_v14 = vadd.s32 127, %v645_v56  ;;  %v247_v56 = vpop.permute.xlu1 %246 }
 0x142   : > { %v776_v17 = vsel %vm765_vm9, nan, %v775_v5  ;;  %v1611_v18 = vsel %vm765_vm9, nan, %v1610_v9  ;;  %v789_v39 = vsel %vm788_vm15, %v787_v60, 0  ;;  %v940_v30 = vsel %vm938_vm14, %v939_v40, %v2891_v1 }
 0x143   : > { %1093 = vst [vmem:[%s2667_s13 + $0x20] sm:$0xff] %v776_v17  ;;  %1925 = vst [vmem:[%s2667_s13 + $0x60] sm:$0xff] %v1611_v18  ;;  %v644_v33 = vor.u32 %v643_v52, %v642_v49  ;;  %v647_v44 = vshll.u32 %v646_v14, 23  ;;  %v791_v63 = vand.u32 31, %v789_v39  ;;  %v656_v25 = vsel %vm571_vm0, %v655_v38, %v2833_v35 }
 0x144   : > { %v941_v16 = vadd.s32 %v940_v30, %v936_v10  ;;  %v777_v50 = vand.u32 2147483647, %v2820_v11  ;;  %vm2932_vm1 = vcmp.le.f32.partialorder %v569_v27, 0.7853982  ;;  %v2948_v62 = vshrl.u32 %v789_v39, 5 }
 0x145   : > { %v648_v24 = vor.u32 4788187, %v647_v44  ;;  %v792_v55 = vsub.s32 32, %v791_v63  ;;  %v651_v6 = vcvt.s32.f32 %v644_v33  ;;  %v658_v54 = vsel %vm2932_vm1, 0, %v656_v25 }
 0x146   : > { %v942_v0 = vadd.s32 536870912, %v941_v16  ;;  %v784_v27 = vand.u32 8388607, %v777_v50  ;;  %v803_v31 = vshll.u32 %v2258_v46, %v791_v63  ;;  %v794_v13 = vshll.u32 %v2255_v36, %v791_v63 }
 0x147   : > { %v649_v3 = vand.u32 2147483647, %v648_v24  ;;  %v795_v35 = vshrl.u32 %v2256_v41, %v792_v55  ;;  %v798_v7 = vshrl.u32 %v2257_v43, %v792_v55  ;;  %v804_v21 = vshrl.u32 %v2259_v48, %v792_v55 }
 0x148   : > { %v2938_v8 = vshrl.u32 %v942_v0, 30  ;;  %v801_v28 = vshrl.u32 %v2258_v46, %v792_v55  ;;  %v797_v29 = vshll.u32 %v2256_v41, %v791_v63  ;;  %v800_v20 = vshll.u32 %v2257_v43, %v791_v63 }
 0x149   : > { %v652_v4 = vmul.f32 %v651_v6, %v649_v3  ;;  %v805_v1 = vor.u32 %v804_v21, %v803_v31  ;;  %v807_v61 = vshrl.u32 %v2260_v57, %v792_v55  ;;  %v662_v51 = vadd.s32 3, %v658_v54 }
 0x14a   : > { %v944_v12 = vshll.u32 %v2938_v8, 30  ;;  %v796_v42 = vor.u32 %v795_v35, %v794_v13  ;;  %v799_v2 = vor.u32 %v798_v7, %v797_v29  ;;  %v785_v19 = vor.u32 8388608, %v784_v27 }
 0x14b   : > { %v653_v15 = vxor.u32 2147483648, %v652_v4  ;;  %v802_v59 = vor.u32 %v801_v28, %v800_v20  ;;  %v806_v23 = vshll.u32 %v2259_v48, %v791_v63  ;;  %v2962_v5 = vand.u32 3, %v658_v54 }
 0x14c   : > { %v2954_v47 = vsub.s32 %v941_v16, %v944_v12  ;;  %vm812_vm3 = vcmp.lt.s32.totalorder %v2948_v62, 4  ;;  %vm809_vm4 = vcmp.lt.s32.totalorder %v2948_v62, 1  ;;  %vm811_vm2 = vcmp.lt.s32.totalorder %v2948_v62, 3 }
 0x14d   : > { %v654_v60 = vsel %vm571_vm0, %v653_v15, %v652_v4  ;;  %v808_v45 = vor.u32 %v807_v61, %v806_v23  ;;  %v818_v17 = vsel %vm812_vm3, %v805_v1, 920167782  ;;  %v817_v52 = vsel %vm809_vm4, %v796_v42, %v799_v2 }
 0x14e   : > { %v657_v38 = vsel %vm2932_vm1, %v2567_v37, %v654_v60  ;;  %v947_v9 = vsub.s32 0, %v2954_v47  ;;  %v663_v49 = vand.u32 3, %v662_v51  ;;  %v819_v14 = vsel %vm811_vm2, %v802_v59, %v818_v17 }
 0x14f   : > { %2171 = vcosq.f32 %v657_v38  ;;  %v2975_v40 = vshll.u32 %v785_v19, 8  ;;  %v2978_v10 = vadd.f32 %v247_v56, %v2897_v53  ;;  %vm810_vm5 = vcmp.lt.s32.totalorder %v2948_v62, 2 }
 0x150   : > { %2173 = vsinq.f32 %v657_v38  ;;  %v2022_v18 = vmin.u32 %v947_v9, %v2954_v47  ;;  %v814_v33 = vsel %vm812_vm3, %v802_v59, 2102212464  ;;  %v821_v44 = vsel %vm809_vm4, %v799_v2, %v802_v59 }
 0x151   : > { %vm1504_vm6 = vcmp.eq.s32.totalorder %v2962_v5, 2  ;;  %v793_v30 = vshrl.u32 %v2255_v36, %v792_v55  ;;  %v820_v63 = vsel %vm810_vm5, %v817_v52, %v819_v14  ;;  %v822_v53 = vsel %vm812_vm3, %v808_v45, 1326507024 }
 0x152   : > { %v949_v39 = vclz %v2022_v18  ;;  %vm1501_vm7 = vcmp.eq.s32.totalorder %v2962_v5, 0  ;;  %v823_v16 = vsel %vm811_vm2, %v805_v1, %v822_v53  ;;  %vm1500_vm8 = vcmp.lt.s32.totalorder %v2962_v5, 2 }
 0x153   : > { %v2995_v24 = vmul.u32.u64.low %v2975_v40, %v820_v63  ;;  %v2996_v26 = vmul.u32.u64.high %v2975_v40, %v820_v63, %v2995_v24  ;;  %vm883_vm9 = vcmp.lt.s32.totalorder %v2733_v22, 0  ;;  %v813_v55 = vsel %vm809_vm4, %v793_v30, %v796_v42 }
 0x154   : > { %v2023_v25 = vadd.s32 4294967294, %v949_v39  ;;  %v815_v0 = vsel %vm811_vm2, %v799_v2, %v814_v33  ;;  %v824_v3 = vsel %vm810_vm5, %v821_v44, %v823_v16  ;;  %v988_v6 = vand.u32 2139095040, %v2978_v10 }
 0x155   : > { %vm661_vm10 = vweird.f32 %v2567_v37  ;;  %vm664_vm11 = vcmp.lt.s32.totalorder %v663_v49, 2  ;;  %v3010_v54 = vmul.u32.u64.low %v2975_v40, %v824_v3  ;;  %v3011_v35 = vmul.u32.u64.high %v2975_v40, %v824_v3, %v3010_v54 }
 0x156   : > { %vm2024_vm12 = vcmp.lt.s32.totalorder %v2023_v25, 0  ;;  %vm665_vm13 = vcmp.eq.s32.totalorder %v663_v49, 0  ;;  %vm668_vm14 = vcmp.eq.s32.totalorder %v663_v49, 2  ;;  %v989_v21 = vshrl.u32 %v988_v6, 23 }
 0x157   : > { %v952_v7 = vsel %vm2024_vm12, 0, %v2023_v25  ;;  %vm3015_vm15 = vcmp.le.f32.partialorder %v881_v58, 0.7853982  ;;  %v937_v27 = vadd.s32 %v2890_v32, %v2886_v34  ;;  %v816_v12 = vsel %vm810_vm5, %v813_v55, %v815_v0 }
 0x158   : > { %v953_v28 = vsub.s32 32, %v952_v7  ;;  %v957_v31 = vsub.s32 4294967266, %v952_v7  ;;  %v967_v29 = vsub.s32 4, %v2938_v8  ;;  %v835_v15 = vadd.s32 1, %v2996_v26 }
 0x159   : > { %v2172_v13 = vpop.eup %2171  ;;  %v985_v20 = vand.u32 2147483647, %v2978_v10  ;;  %v2025_v1 = vadd.s32 4294967169, %v989_v21  ;;  %v954_v51 = vshll.u32 %v2954_v47, %v952_v7  ;;  %v832_v32 = vmul.u32 %v2975_v40, %v816_v12 }
 0x15a   : > { %v2174_v58 = vpop.eup %2173  ;;  %v669_v61 = vxor.u32 2147483648, %v2172_v13  ;;  %v955_v42 = vshrl.u32 %v937_v27, %v953_v28  ;;  %v958_v2 = vadd.s32 127, %v957_v31  ;;  %vm834_vm0 = vc.u32 %v3011_v35, %v2995_v24 }
 0x15b   : > { %v666_v34 = vxor.u32 2147483648, %v2174_v58  ;;  %v995_v62 = vadd.s32 1, %v2025_v1  ;;  %v836_v9 = vsel %vm834_vm0, %v835_v15, %v2996_v26  ;;  %v968_v18 = vsel %vm883_vm9, %v967_v29, %v2938_v8 }
 0x15c   : > { %v670_v60 = vsel %vm668_vm14, %v669_v61, %v2174_v58  ;;  %v1506_v19 = vsel %vm1504_vm6, %v669_v61, %v2174_v58  ;;  %v956_v59 = vor.u32 %v955_v42, %v954_v51  ;;  %v959_v23 = vshll.u32 %v958_v2, 23 }
 0x15d   : > { %v667_v47 = vsel %vm665_vm13, %v2172_v13, %v666_v34  ;;  %v1503_v38 = vsel %vm1501_vm7, %v2172_v13, %v666_v34  ;;  %vm996_vm1 = vcmp.gt.s32.totalorder %v995_v62, 0  ;;  %v837_v40 = vadd.s32 %v836_v9, %v832_v32 }
 0x15e   : > { %v671_v56 = vsel %vm664_vm11, %v667_v47, %v670_v60  ;;  %v1507_v45 = vsel %vm1500_vm8, %v1503_v38, %v1506_v19  ;;  %v960_v17 = vor.u32 4788187, %v959_v23  ;;  %v997_v39 = vsel %vm996_vm1, %v995_v62, 0 }
 0x15f   : > { %v672_v52 = vsel %vm661_vm10, nan, %v671_v56  ;;  %v1508_v14 = vsel %vm661_vm10, nan, %v1507_v45  ;;  %v963_v33 = vcvt.s32.f32 %v956_v59  ;;  %v992_v5 = vand.u32 8388607, %v985_v20 }
 0x160   : > { %1092 = vst [vmem:[%s2667_s13 + $0x18] sm:$0xff] %v672_v52  ;;  %1924 = vst [vmem:[%s2667_s13 + $0x58] sm:$0xff] %v1508_v14  ;;  %v961_v49 = vand.u32 2147483647, %v960_v17  ;;  %v999_v44 = vand.u32 31, %v997_v39  ;;  %v970_v30 = vsel %vm3015_vm15, 0, %v968_v18  ;;  %v833_v45 = vadd.s32 %v2995_v24, %v3011_v35 }
 0x161   : > { %v838_v8 = vadd.s32 536870912, %v837_v40  ;;  %v974_v16 = vadd.s32 3, %v970_v30  ;;  %v3055_v26 = vand.u32 3, %v970_v30  ;;  %v993_v55 = vor.u32 8388608, %v992_v5 }
 0x162   : > { %v964_v63 = vmul.f32 %v963_v33, %v961_v49  ;;  %v1000_v53 = vsub.s32 32, %v999_v44  ;;  %v3058_v3 = vshrl.u32 %v997_v39, 5  ;;  %v1002_v13 = vshll.u32 %v2255_v36, %v999_v44 }
 0x163   : > { %v3053_v25 = vshrl.u32 %v838_v8, 30  ;;  %v1005_v29 = vshll.u32 %v2256_v41, %v999_v44  ;;  %v1008_v15 = vshll.u32 %v2257_v43, %v999_v44  ;;  %v1011_v1 = vshll.u32 %v2258_v46, %v999_v44 }
 0x164   : > { %v965_v37 = vxor.u32 2147483648, %v964_v63  ;;  %v1003_v6 = vshrl.u32 %v2256_v41, %v1000_v53  ;;  %v1006_v54 = vshrl.u32 %v2257_v43, %v1000_v53  ;;  %v1009_v21 = vshrl.u32 %v2258_v46, %v1000_v53 }
 0x165   : > { %v840_v0 = vshll.u32 %v3053_v25, 30  ;;  %v1012_v27 = vshrl.u32 %v2259_v48, %v1000_v53  ;;  %v1015_v28 = vshrl.u32 %v2260_v57, %v1000_v53  ;;  %v1014_v58 = vshll.u32 %v2259_v48, %v999_v44 }
 0x166   : > { %v966_v7 = vsel %vm883_vm9, %v965_v37, %v964_v63  ;;  %v1004_v61 = vor.u32 %v1003_v6, %v1002_v13  ;;  %v1007_v51 = vor.u32 %v1006_v54, %v1005_v29  ;;  %v975_v4 = vand.u32 3, %v974_v16 }
 0x167   : > { %v969_v31 = vsel %vm3015_vm15, %v2733_v22, %v966_v7  ;;  %v3070_v12 = vsub.s32 %v837_v40, %v840_v0  ;;  %v1010_v42 = vor.u32 %v1009_v21, %v1008_v15  ;;  %v1013_v2 = vor.u32 %v1012_v27, %v1011_v1 }
 0x168   : > { %2175 = vcosq.f32 %v969_v31  ;;  %v1016_v34 = vor.u32 %v1015_v28, %v1014_v58  ;;  %vm1813_vm3 = vcmp.eq.s32.totalorder %v3055_v26, 2  ;;  %vm1017_vm4 = vcmp.lt.s32.totalorder %v3058_v3, 1 }
 0x169   : > { %2177 = vsinq.f32 %v969_v31  ;;  %v843_v57 = vsub.s32 0, %v3070_v12  ;;  %vm1810_vm2 = vcmp.eq.s32.totalorder %v3055_v26, 0  ;;  %vm1020_vm5 = vcmp.lt.s32.totalorder %v3058_v3, 4 }
 0x16a   : > { %v1025_v43 = vsel %vm1017_vm4, %v1004_v61, %v1007_v51  ;;  %v1033_v46 = vshll.u32 %v993_v55, 8  ;;  %vm976_vm6 = vcmp.lt.s32.totalorder %v975_v4, 2  ;;  %vm1809_vm7 = vcmp.lt.s32.totalorder %v3055_v26, 2 }
 0x16b   : > { %v2018_v32 = vmin.u32 %v843_v57, %v3070_v12  ;;  %vm1019_vm8 = vcmp.lt.s32.totalorder %v3058_v3, 3  ;;  %v1026_v48 = vsel %vm1020_vm5, %v1013_v2, 920167782  ;;  %v1029_v62 = vsel %vm1017_vm4, %v1007_v51, %v1010_v42 }
 0x16c   : > { %v1030_v60 = vsel %vm1020_vm5, %v1016_v34, 1326507024  ;;  %vm973_vm9 = vweird.f32 %v2733_v22  ;;  %vm1018_vm10 = vcmp.lt.s32.totalorder %v3058_v3, 2  ;;  %v1027_v59 = vsel %vm1019_vm8, %v1010_v42, %v1026_v48 }
 0x16d   : > { %v845_v41 = vclz %v2018_v32  ;;  %v1031_v23 = vsel %vm1019_vm8, %v1013_v2, %v1030_v60  ;;  %v1001_v47 = vshrl.u32 %v2255_v36, %v1000_v53  ;;  %v1022_v38 = vsel %vm1020_vm5, %v1010_v42, 2102212464 }
 0x16e   : > { %v1028_v9 = vsel %vm1018_vm10, %v1025_v43, %v1027_v59  ;;  %v1032_v56 = vsel %vm1018_vm10, %v1029_v62, %v1031_v23  ;;  %v1023_v24 = vsel %vm1019_vm8, %v1007_v51, %v1022_v38  ;;  %vm977_vm12 = vcmp.eq.s32.totalorder %v975_v4, 0 }
 0x16f   : > { %v2019_v19 = vadd.s32 4294967294, %v845_v41  ;;  %v3102_v17 = vmul.u32.u64.low %v1033_v46, %v1032_v56  ;;  %v3103_v18 = vmul.u32.u64.high %v1033_v46, %v1032_v56, %v3102_v17  ;;  %v1021_v40 = vsel %vm1017_vm4, %v1001_v47, %v1004_v61 }
 0x170   : > { %v3107_v36 = vmul.u32.u64.low %v1033_v46, %v1028_v9  ;;  %v3108_v39 = vmul.u32.u64.high %v1033_v46, %v1028_v9, %v3107_v36  ;;  %vm980_vm13 = vcmp.eq.s32.totalorder %v975_v4, 2  ;;  %v1024_v0 = vsel %vm1018_vm10, %v1021_v40, %v1023_v24 }
 0x171   : > { %vm2020_vm11 = vcmp.lt.s32.totalorder %v2019_v19, 0  ;;  %v863_v1 = vsub.s32 4, %v3053_v25  ;;  %vm779_vm15 = vcmp.lt.s32.totalorder %v2820_v11, 0  ;;  %vm778_vm0 = vcmp.le.f32.partialorder %v777_v50, 0.7853982 }
 0x172   : > { %v2176_v52 = vpop.eup %2175  ;;  %v848_v14 = vsel %vm2020_vm11, 0, %v2019_v19  ;;  %vm1042_vm14 = vc.u32 %v3103_v18, %v3107_v36  ;;  %v1043_v31 = vadd.s32 1, %v3108_v39  ;;  %v1041_v38 = vadd.s32 %v3107_v36, %v3103_v18 }
 0x173   : > { %v2178_v49 = vpop.eup %2177  ;;  %v981_v33 = vxor.u32 2147483648, %v2176_v52  ;;  %v849_v5 = vsub.s32 32, %v848_v14  ;;  %v853_v44 = vsub.s32 4294967266, %v848_v14  ;;  %v850_v30 = vshll.u32 %v3070_v12, %v848_v14 }
 0x174   : > { %v978_v35 = vxor.u32 2147483648, %v2178_v49  ;;  %v1040_v12 = vmul.u32 %v1033_v46, %v1024_v0  ;;  %v1044_v13 = vsel %vm1042_vm14, %v1043_v31, %v3108_v39  ;;  %v864_v51 = vsel %vm779_vm15, %v863_v1, %v3053_v25 }
 0x175   : > { %v982_v8 = vsel %vm980_vm13, %v981_v33, %v2178_v49  ;;  %v1815_v63 = vsel %vm1813_vm3, %v981_v33, %v2178_v49  ;;  %v851_v53 = vshrl.u32 %v833_v45, %v849_v5  ;;  %v854_v37 = vadd.s32 127, %v853_v44 }
 0x176   : > { %v979_v16 = vsel %vm977_vm12, %v2176_v52, %v978_v35  ;;  %v1812_v55 = vsel %vm1810_vm2, %v2176_v52, %v978_v35  ;;  %v1045_v26 = vadd.s32 %v1044_v13, %v1040_v12  ;;  %v866_v34 = vsel %vm778_vm0, 0, %v864_v51 }
 0x177   : > { %v983_v6 = vsel %vm976_vm6, %v979_v16, %v982_v8  ;;  %v1816_v54 = vsel %vm1809_vm7, %v1812_v55, %v1815_v63  ;;  %v852_v7 = vor.u32 %v851_v53, %v850_v30  ;;  %v855_v21 = vshll.u32 %v854_v37, 23 }
 0x178   : > { %v984_v27 = vsel %vm973_vm9, nan, %v983_v6  ;;  %v1817_v28 = vsel %vm973_vm9, nan, %v1816_v54  ;;  %v1046_v57 = vadd.s32 536870912, %v1045_v26  ;;  %v870_v43 = vadd.s32 3, %v866_v34 }
 0x179   : > { %1095 = vst [vmem:[%s2667_s13 + $0x30] sm:$0xff] %v984_v27  ;;  %1927 = vst [vmem:[%s2667_s13 + $0x70] sm:$0xff] %v1817_v28  ;;  %v856_v3 = vor.u32 4788187, %v855_v21  ;;  %v859_v15 = vcvt.s32.f32 %v852_v7  ;;  %v1705_v48 = vand.u32 3, %v866_v34  ;;  %vm869_vm8 = vweird.f32 %v2820_v11 }
 0x17a   : > { %v1047_v22 = vshrl.u32 %v1046_v57, 30  ;;  %v871_v60 = vand.u32 3, %v870_v43  ;;  %vm987_vm9 = vcmp.lt.s32.totalorder %v2978_v10, 0  ;;  %vm986_vm10 = vcmp.le.f32.partialorder %v985_v20, 0.7853982 }
 0x17b   : > { %v857_v29 = vand.u32 2147483647, %v856_v3  ;;  %vm1706_vm1 = vcmp.lt.s32.totalorder %v1705_v48, 2  ;;  %vm1707_vm3 = vcmp.eq.s32.totalorder %v1705_v48, 0  ;;  %vm1710_vm4 = vcmp.eq.s32.totalorder %v1705_v48, 2 }
 0x17c   : > { %v1048_v42 = vshll.u32 %v1047_v22, 30  ;;  %vm872_vm5 = vcmp.lt.s32.totalorder %v871_v60, 2  ;;  %vm876_vm6 = vcmp.eq.s32.totalorder %v871_v60, 2  ;;  %vm873_vm7 = vcmp.eq.s32.totalorder %v871_v60, 0 }
 0x17d   : > { %v860_v58 = vmul.f32 %v859_v15, %v857_v29  ;;  %v1071_v53 = vsub.s32 4, %v1047_v22 }
 0x17e   : > { %v1049_v32 = vsub.s32 %v1045_v26, %v1048_v42 }
 0x17f   : > { %v861_v61 = vxor.u32 2147483648, %v860_v58  ;;  %v1072_v16 = vsel %vm987_vm9, %v1071_v53, %v1047_v22 }
 0x180   : > { %v1051_v41 = vsub.s32 0, %v1049_v32  ;;  %v1074_v0 = vsel %vm986_vm10, 0, %v1072_v16 }
 0x181   : > { %v862_v4 = vsel %vm779_vm15, %v861_v61, %v860_v58  ;;  %v1078_v6 = vadd.s32 3, %v1074_v0  ;;  %v1911_v7 = vand.u32 3, %v1074_v0 }
 0x182   : > { %v865_v2 = vsel %vm778_vm0, %v2820_v11, %v862_v4  ;;  %v2026_v46 = vmin.u32 %v1051_v41, %v1049_v32 }
 0x183   : > { %2179 = vcosq.f32 %v865_v2  ;;  %v1079_v54 = vand.u32 3, %v1078_v6  ;;  %vm1916_vm12 = vcmp.eq.s32.totalorder %v1911_v7, 2  ;;  %vm1913_vm14 = vcmp.eq.s32.totalorder %v1911_v7, 0 }
 0x184   : > { %2181 = vsinq.f32 %v865_v2  ;;  %v1053_v62 = vclz %v2026_v46  ;;  %vm1912_vm0 = vcmp.lt.s32.totalorder %v1911_v7, 2 }
 0x185   : > { %vm1084_vm11 = vcmp.eq.s32.totalorder %v1079_v54, 2  ;;  %vm1081_vm13 = vcmp.eq.s32.totalorder %v1079_v54, 0  ;;  %vm1080_vm15 = vcmp.lt.s32.totalorder %v1079_v54, 2 }
 0x186   : > { %v2027_v19 = vadd.s32 4294967294, %v1053_v62 }
 0x188   : > { %vm2028_vm2 = vcmp.lt.s32.totalorder %v2027_v19, 0 }
 0x189   : > { %v1056_v23 = vsel %vm2028_vm2, 0, %v2027_v19 }
 0x18a   : > { %v1057_v9 = vsub.s32 32, %v1056_v23  ;;  %v1061_v56 = vsub.s32 4294967266, %v1056_v23  ;;  %v1058_v52 = vshll.u32 %v1049_v32, %v1056_v23 }
 0x18c   : > { %v1059_v39 = vshrl.u32 %v1041_v38, %v1057_v9  ;;  %v1062_v49 = vadd.s32 127, %v1061_v56 }
 0x18d   : > { %v2180_v59 = vpop.eup %2179 }
 0x18e   : > { %v2182_v50 = vpop.eup %2181  ;;  %v877_v25 = vxor.u32 2147483648, %v2180_v59  ;;  %v1060_v44 = vor.u32 %v1059_v39, %v1058_v52  ;;  %v1063_v24 = vshll.u32 %v1062_v49, 23 }
 0x18f   : > { %v874_v47 = vxor.u32 2147483648, %v2182_v50 }
 0x190   : > { %v878_v45 = vsel %vm876_vm6, %v877_v25, %v2182_v50  ;;  %v1712_v17 = vsel %vm1710_vm4, %v877_v25, %v2182_v50  ;;  %v1064_v35 = vor.u32 4788187, %v1063_v24  ;;  %v1067_v8 = vcvt.s32.f32 %v1060_v44 }
 0x191   : > { %v875_v14 = vsel %vm873_vm7, %v2180_v59, %v874_v47  ;;  %v1709_v40 = vsel %vm1707_vm3, %v2180_v59, %v874_v47 }
 0x192   : > { %v879_v33 = vsel %vm872_vm5, %v875_v14, %v878_v45  ;;  %v1713_v5 = vsel %vm1706_vm1, %v1709_v40, %v1712_v17  ;;  %v1065_v30 = vand.u32 2147483647, %v1064_v35  ;;  %vm1077_vm1 = vweird.f32 %v2978_v10 }
 0x193   : > { %v880_v18 = vsel %vm869_vm8, nan, %v879_v33  ;;  %v1714_v36 = vsel %vm869_vm8, nan, %v1713_v5 }
 0x194   : > { %1094 = vst [vmem:[%s2667_s13 + $0x28] sm:$0xff] %v880_v18  ;;  %1926 = vst [vmem:[%s2667_s13 + $0x68] sm:$0xff] %v1714_v36  ;;  %v1068_v63 = vmul.f32 %v1067_v8, %v1065_v30 }
 0x196   : > { %v1069_v37 = vxor.u32 2147483648, %v1068_v63 }
 0x198   : > { %v1070_v11 = vsel %vm987_vm9, %v1069_v37, %v1068_v63 }
 0x199   : > { %v1073_v55 = vsel %vm986_vm10, %v2978_v10, %v1070_v11 }
 0x19a   : > { %2183 = vcosq.f32 %v1073_v55 }
 0x19b   : > { %2185 = vsinq.f32 %v1073_v55 }
 0x1a4   : > { %v2184_v21 = vpop.eup %2183 }
 0x1a5   : > { %v2186_v27 = vpop.eup %2185  ;;  %v1085_v28 = vxor.u32 2147483648, %v2184_v21 }
 0x1a6   : > { %v1082_v31 = vxor.u32 2147483648, %v2186_v27 }
 0x1a7   : > { %v1086_v20 = vsel %vm1084_vm11, %v1085_v28, %v2186_v27  ;;  %v1918_v3 = vsel %vm1916_vm12, %v1085_v28, %v2186_v27 }
 0x1a8   : > { %v1083_v12 = vsel %vm1081_vm13, %v2184_v21, %v1082_v31  ;;  %v1915_v13 = vsel %vm1913_vm14, %v2184_v21, %v1082_v31 }
 0x1a9   : > { %v1087_v29 = vsel %vm1080_vm15, %v1083_v12, %v1086_v20  ;;  %v1919_v15 = vsel %vm1912_vm0, %v1915_v13, %v1918_v3 }
 0x1aa   : > { %v1088_v26 = vsel %vm1077_vm1, nan, %v1087_v29  ;;  %v1920_v1 = vsel %vm1077_vm1, nan, %v1919_v15 }
 0x1ab   : > { %1096 = vst [vmem:[%s2667_s13 + $0x38] sm:$0xff] %v1088_v26  ;;  %1928 = vst [vmem:[%s2667_s13 + $0x78] sm:$0xff] %v1920_v1 }
 0x1ac   : > { %2200 = shalt.err (!%p2197_p2)
}
 0x1ad   : > { %s2201_s26 = scalar_lea.hbm %s3156_s20, 2048  ;;  %s2205_s29 = scalar_lea.hbm %s3207_s1, 4096 }
 0x1ae   : > { %p2202_p3 = scmp.ne.s32.totalorder %s3156_s20, %s2201_s26  ;;  %p2206_p8 = scmp.lt.u32.totalorder %s3156_s20, %s3207_s1 }
 0x1af   : > { %p2207_p9 = scmp.lt.u32.totalorder %s2205_s29, %s2201_s26  ;;  %p2209_p11 = scmp.lt.u32.totalorder %s2201_s26, %s3156_s20 }
 0x1b0   : > { %p2203_p4 = pnand %p2202_p3, %p2312_p5 }
 0x1b1   : > { %p2208_p10 = por %p2207_p9, %p2206_p8 }
 0x1b2   : > { %p2204_p7 = pneg %p2203_p4 }
 0x1b3   : > { %p2210_p12 = por %p2209_p11, %p2208_p10 }
 0x1b5   : > { %p2211_p13 = pnand %p2210_p12, %p2204_p7 }
 0x1b7   : > { %2214 = shalt.err (!%p2211_p13)
}
 0x1b8   : > { %s2262_s3 = smov 128   ;;  %s2263_s4 = smov 256  }
 0x1b9   : > { %s2264_s5 = smov 8  }
 0x1ba   : > { %2097 = dma.vmem_to_hbm [thread:$0]  (%p2312_p5), %s3158_s14, 2048, %s3156_s20, %s3165_s21, %s2262_s3, %s2263_s4, %s2264_s5  }
 0x1bb PF: > { %p2103_p0 = scmp.ge.s32.totalorder %s2249_s9, 2  ;;  %s1957_s10 = sand.u32 1, %s2237_s6  }
 0x1bc   : > { %s1958_s11 = scalar_lea.sflag [#allocation3], %s1957_s10 }
 0x1bd   : > { %p2100_p1 = pnand %p2103_p0, %p2316_p6 }
 0x1bf   : > { %2232 = dma.done.wait (!%p2100_p1), %s1958_s11, 2048  }
 0x1c0   : > { %2234 = vsyncadd (!%p2100_p1), %s1958_s11, 4294965248  ;;  %p11_p2 = scmp.ge.s32.totalorder %s2298_s12, 4   ;;  %s3222_s6 = smov %s2241_s7 }
 0x1c1   : > { %s3223_s7 = smov %s2245_s8  ;;  %s3224_s8 = smov %s2310_s15 }
 0x1c2   : > { %s3225_s9 = smov %s2298_s12  ;;  %13 = sbr.rel (!%p11_p2) target bundleno = 3 (0x3), region = 56 }
 0x1c9   :  { %1963 = vsyncpa [#allocation3], 1 }
 0x1ca   :  { %1965 = vsyncpa [#allocation3 + $0x1], 1 }

</bundles_post_ra>
